<compile_context>
chip_gen: v6e
topology: v6e:2x2x1
jax: 0.10.0
libtpu: 0.0.40
codegen_flags: <defaults>
</compile_context>

<pallas_src>
import functools

import jax
import jax.numpy as jnp
from jax import lax
from jax.experimental import pallas as pl
from jax.experimental.pallas import tpu as pltpu

LN_EPS = 1e-5  # PyTorch nn.LayerNorm default


# --------------------------------------------------------------------------
# Shared per-head attention body (writes each head's output into o_s).
# Scale is pre-folded into the q projection, so scores are used as-is.
# --------------------------------------------------------------------------
def _mha_into_scratch(head, d, q, k, v, o_s):
    # Contract the last dim of q with the last dim of k -> no transpose of k.
    dn = (((1,), (1,)), ((), ()))
    for h in range(head):
        sl = slice(h * d, (h + 1) * d)
        s = lax.dot_general(q[:, sl], k[:, sl], dn,
                            preferred_element_type=jnp.float32)
        s = s - jnp.max(s, axis=-1, keepdims=True)
        p = jnp.exp(s)
        p = p * pl.reciprocal(jnp.sum(p, axis=-1, keepdims=True), approx=True)
        o_s[:, sl] = jnp.dot(p.astype(jnp.bfloat16), v[:, sl],
                             preferred_element_type=jnp.float32)


# --------------------------------------------------------------------------
# Pallas kernels
# --------------------------------------------------------------------------
def _attention_kernel_sr(head, dim,
                         x_ref, xp_ref,
                         wq_ref, bq_ref,
                         wsr_ref, bsr_ref,
                         gamma_ref, beta_ref,
                         wk_ref, bk_ref, wv_ref, bv_ref,
                         wproj_ref, bproj_ref,
                         out_ref,
                         k_s, v_s, o_s):
    """Query-tiled attention with spatial reduction (sr_ratio > 1)."""
    d = dim // head
    qi = pl.program_id(1)

    # K/V path once per batch; resident in VMEM scratch across query tiles.
    @pl.when(qi == 0)
    def _():
        xp = xp_ref[0]                                        # (Np, C*sr*sr) bf16
        xr = jnp.dot(xp, wsr_ref[...],
                     preferred_element_type=jnp.float32) + bsr_ref[0]
        mean = jnp.mean(xr, axis=-1, keepdims=True)
        var = jnp.mean(jnp.square(xr - mean), axis=-1, keepdims=True)
        xn = (xr - mean) * lax.rsqrt(var + LN_EPS) * gamma_ref[0] + beta_ref[0]
        xn = xn.astype(jnp.bfloat16)
        k_s[...] = (jnp.dot(xn, wk_ref[...],
                            preferred_element_type=jnp.float32)
                    + bk_ref[0]).astype(jnp.bfloat16)
        v_s[...] = (jnp.dot(xn, wv_ref[...],
                            preferred_element_type=jnp.float32)
                    + bv_ref[0]).astype(jnp.bfloat16)

    # q projection for this query tile (scale already folded into wq/bq).
    xq = x_ref[0]                                             # (TQ, C) bf16
    q = (jnp.dot(xq, wq_ref[...], preferred_element_type=jnp.float32)
         + bq_ref[0]).astype(jnp.bfloat16)

    _mha_into_scratch(head, d, q, k_s[...], v_s[...], o_s)

    out = jnp.dot(o_s[...].astype(jnp.bfloat16), wproj_ref[...],
                  preferred_element_type=jnp.float32) + bproj_ref[0]
    out_ref[0] = out.astype(out_ref.dtype)


def _attention_kernel_nosr(head, dim, tile_q,
                           x_ref,
                           wq_ref, bq_ref,
                           wk_ref, bk_ref, wv_ref, bv_ref,
                           wproj_ref, bproj_ref,
                           out_ref,
                           k_s, v_s, o_s):
    """Query-tiled attention, sr_ratio == 1 (single HBM stream of x)."""
    d = dim // head
    qi = pl.program_id(1)

    @pl.when(qi == 0)
    def _():
        xf = x_ref[0]                                         # (N, C) bf16
        k_s[...] = (jnp.dot(xf, wk_ref[...],
                            preferred_element_type=jnp.float32)
                    + bk_ref[0]).astype(jnp.bfloat16)
        v_s[...] = (jnp.dot(xf, wv_ref[...],
                            preferred_element_type=jnp.float32)
                    + bv_ref[0]).astype(jnp.bfloat16)

    i0 = pl.multiple_of(qi * tile_q, tile_q)
    xq = x_ref[0, pl.ds(i0, tile_q), :]                       # (TQ, C) bf16
    q = (jnp.dot(xq, wq_ref[...], preferred_element_type=jnp.float32)
         + bq_ref[0]).astype(jnp.bfloat16)

    _mha_into_scratch(head, d, q, k_s[...], v_s[...], o_s)

    out = jnp.dot(o_s[...].astype(jnp.bfloat16), wproj_ref[...],
                  preferred_element_type=jnp.float32) + bproj_ref[0]
    out_ref[0] = out.astype(out_ref.dtype)


# --------------------------------------------------------------------------
# Glue / wrapper
# --------------------------------------------------------------------------
def _patchify(x, H, W, sr):
    """(B, N, C) -> (B, N', C*sr*sr) with (c, kh, kw)-ordered patch vectors
    so the matmul matches PyTorch Conv2d(OIHW) with kernel=stride=sr."""
    B, N, C = x.shape
    xi = x.reshape(B, H // sr, sr, W // sr, sr, C)
    xi = xi.transpose(0, 1, 3, 5, 2, 4)            # (B, H', W', C, sr, sr)
    return xi.reshape(B, (H // sr) * (W // sr), C * sr * sr)


def _pick_tile_q(N, target=128):
    """Largest divisor of N that is <= target and a multiple of 8 (else N)."""
    if N <= target:
        return N
    for t in range(target, 0, -1):
        if N % t == 0 and t % 8 == 0:
            return t
    return N


def _full_spec(shape):
    nd = len(shape)
    return pl.BlockSpec(shape, lambda b, qi, _nd=nd: (0,) * _nd)


def _vmem_limit_bytes(TQ, Nk, C, csr, sr_ratio):
    f32, bf16 = 4, 2
    est = 0
    est += 2 * TQ * C * bf16                # query tile (double-buffered, bf16)
    est += 2 * TQ * C * f32                 # output tile (double-buffered)
    if sr_ratio > 1:
        est += 2 * Nk * csr * bf16          # patchified kv source
        est += 2 * csr * C * bf16           # sr conv weight
    else:
        est += 2 * Nk * C * bf16            # full x block for kv path (bf16)
    est += 2 * 4 * C * C * bf16             # q/k/v/proj weights
    est += 2 * Nk * C * bf16                # k / v scratch
    est += TQ * C * f32                     # per-head output scratch
    est += 2 * TQ * Nk * f32                # live score matrix temporaries
    est += 4 * TQ * C * f32                 # misc temporaries
    return int(min(max(2 * est + (4 << 20), 32 << 20), 48 << 20))


def attention_pallas(x, params, H, W, head, sr_ratio, tile_q=128):
    B, N, C = x.shape
    d = C // head
    scale = d ** (-0.5)
    TQ = _pick_tile_q(N, tile_q)
    n_qt = N // TQ
    bf16 = jnp.bfloat16
    f32 = jnp.float32
    out_dtype = x.dtype

    # Weights as bf16 MXU operands (accumulation stays f32 in-kernel);
    # biases / LN affine stay f32.  kv weight split -> no 2C lane slicing.
    # Attention scale is folded into the q projection.
    wq = (params["w_q"] * scale).astype(bf16)
    wk = params["w_kv"][:, :C].astype(bf16)
    wv = params["w_kv"][:, C:].astype(bf16)
    wp = params["w_proj"].astype(bf16)
    bq = (params["b_q"] * scale).reshape(1, C).astype(f32)
    bk = params["b_kv"][:C].reshape(1, C).astype(f32)
    bv = params["b_kv"][C:].reshape(1, C).astype(f32)
    bp = params["b_proj"].reshape(1, C).astype(f32)

    # x is only ever consumed as a bf16 MXU operand -> stream it in bf16.
    xb = x.astype(bf16)

    out_shape = jax.ShapeDtypeStruct((B, N, C), out_dtype)
    out_spec = pl.BlockSpec((1, TQ, C), lambda b, qi: (b, qi, 0))

    if sr_ratio > 1:
        xp = _patchify(x, H, W, sr_ratio).astype(bf16)         # (B, Np, C*sr*sr)
        Np = xp.shape[1]
        csr = C * sr_ratio * sr_ratio
        wsr = params["w_sr"].reshape(C, csr).T.astype(bf16)    # (C*sr*sr, C)
        bsr = params["b_sr"].reshape(1, C).astype(f32)
        gamma = params["gamma"].reshape(1, C).astype(f32)
        beta = params["beta"].reshape(1, C).astype(f32)

        kernel = functools.partial(_attention_kernel_sr, head, C)
        in_specs = [
            pl.BlockSpec((1, TQ, C), lambda b, qi: (b, qi, 0)),   # x query tile
            pl.BlockSpec((1, Np, csr), lambda b, qi: (b, 0, 0)),  # patches (per batch)
            _full_spec((C, C)), _full_spec((1, C)),               # q proj
            _full_spec((csr, C)), _full_spec((1, C)),             # sr conv
            _full_spec((1, C)), _full_spec((1, C)),               # layernorm
            _full_spec((C, C)), _full_spec((1, C)),               # k proj
            _full_spec((C, C)), _full_spec((1, C)),               # v proj
            _full_spec((C, C)), _full_spec((1, C)),               # out proj
        ]
        args = (xb, xp, wq, bq, wsr, bsr, gamma, beta, wk, bk, wv, bv, wp, bp)
        Nk = Np
    else:
        csr = C
        kernel = functools.partial(_attention_kernel_nosr, head, C, TQ)
        in_specs = [
            pl.BlockSpec((1, N, C), lambda b, qi: (b, 0, 0)),     # full x per batch
            _full_spec((C, C)), _full_spec((1, C)),               # q proj
            _full_spec((C, C)), _full_spec((1, C)),               # k proj
            _full_spec((C, C)), _full_spec((1, C)),               # v proj
            _full_spec((C, C)), _full_spec((1, C)),               # out proj
        ]
        args = (xb, wq, bq, wk, bk, wv, bv, wp, bp)
        Nk = N

    scratch_shapes = [
        pltpu.VMEM((Nk, C), bf16),       # resident K
        pltpu.VMEM((Nk, C), bf16),       # resident V
        pltpu.VMEM((TQ, C), f32),        # per-head attention output (no concat)
    ]

    cparams = pltpu.CompilerParams(
        dimension_semantics=("parallel", "arbitrary"),
        vmem_limit_bytes=_vmem_limit_bytes(TQ, Nk, C, csr, sr_ratio),
    )

    return pl.pallas_call(
        kernel,
        out_shape=out_shape,
        grid=(B, n_qt),
        in_specs=in_specs,
        out_specs=out_spec,
        scratch_shapes=scratch_shapes,
        compiler_params=cparams,
    )(*args)


# --------------------------------------------------------------------------
# Pure-JAX reference (f32, uses lax.conv to validate the patchify translation)
# --------------------------------------------------------------------------
def attention_reference(x, params, H, W, head, sr_ratio):
    B, N, C = x.shape
    d = C // head
    scale = d ** (-0.5)

    q = x @ params["w_q"] + params["b_q"]
    q = q.reshape(B, N, head, d).transpose(0, 2, 1, 3)

    if sr_ratio > 1:
        ximg = x.transpose(0, 2, 1).reshape(B, C, H, W)
        xr = jax.lax.conv_general_dilated(
            ximg, params["w_sr"], (sr_ratio, sr_ratio), "VALID",
            dimension_numbers=("NCHW", "OIHW", "NCHW"))
        xr = xr + params["b_sr"].reshape(1, C, 1, 1)
        xr = xr.reshape(B, C, -1).transpose(0, 2, 1)
        mean = xr.mean(-1, keepdims=True)
        var = ((xr - mean) ** 2).mean(-1, keepdims=True)
        xkv = (xr - mean) / jnp.sqrt(var + LN_EPS) * params["gamma"] + params["beta"]
    else:
        xkv = x

    kv = xkv @ params["w_kv"] + params["b_kv"]
    kv = kv.reshape(B, -1, 2, head, d).transpose(2, 0, 3, 1, 4)
    k, v = kv[0], kv[1]

    attn = (q @ jnp.swapaxes(k, -2, -1)) * scale
    attn = jax.nn.softmax(attn, axis=-1)
    o = (attn @ v).transpose(0, 2, 1, 3).reshape(B, N, C)
    return o @ params["w_proj"] + params["b_proj"]


# --------------------------------------------------------------------------
# Deterministic parameter init
# --------------------------------------------------------------------------
def make_params(key, dim, sr_ratio):
    ks = jax.random.split(key, 10)
    p = {
        # stored as (in, out) so kernel does x @ W  (equivalent to Torch x @ W.T)
        "w_q": jax.random.normal(ks[0], (dim, dim), jnp.float32) * 0.05,
        "b_q": jax.random.normal(ks[1], (dim,), jnp.float32) * 0.01,
        "w_kv": jax.random.normal(ks[2], (dim, 2 * dim), jnp.float32) * 0.05,
        "b_kv": jax.random.normal(ks[3], (2 * dim,), jnp.float32) * 0.01,
        "w_proj": jax.random.normal(ks[4], (dim, dim), jnp.float32) * 0.05,
        "b_proj": jax.random.normal(ks[5], (dim,), jnp.float32) * 0.01,
    }
    if sr_ratio > 1:
        p["w_sr"] = jax.random.normal(
            ks[6], (dim, dim, sr_ratio, sr_ratio), jnp.float32) * 0.05  # OIHW
        p["b_sr"] = jax.random.normal(ks[7], (dim,), jnp.float32) * 0.01
        p["gamma"] = 1.0 + jax.random.normal(ks[8], (dim,), jnp.float32) * 0.01
        p["beta"] = jax.random.normal(ks[9], (dim,), jnp.float32) * 0.01
    return p


# --------------------------------------------------------------------------
if __name__ == "__main__":
    key = jax.random.PRNGKey(0)

    configs = [
        # (B, dim, head, H, W, sr_ratio)
        (2, 32, 2, 16, 16, 2),   # N = 256 -> 2 query tiles of 128
        (2, 32, 4, 8, 8, 1),     # N = 64  -> single tile, no spatial reduction
    ]

    ok = True
    for (B, dim, head, H, W, sr_ratio) in configs:
        key, kx, kp = jax.random.split(key, 3)
        N = H * W
        x = jax.random.normal(kx, (B, N, dim), jnp.float32)
        params = make_params(kp, dim, sr_ratio)

        out = attention_pallas(x, params, H, W, head, sr_ratio)
        out = jax.block_until_ready(out)
        ref = attention_reference(x, params, H, W, head, sr_ratio)

        # bf16 MXU operands + approx reciprocal -> loosened tolerance vs f32 ref.
        if not jnp.allclose(out, ref, atol=2e-2, rtol=2e-2):
            ok = False
            print("MISMATCH for config", (B, dim, head, H, W, sr_ratio),
                  "max abs err:", float(jnp.max(jnp.abs(out - ref))))

    if ok:
        print("KERNEL_OK")
</pallas_src>

<mosaic_0001>
module attributes {stable_mosaic.version = 11 : i64} {
  func.func @_attention_kernel_sr(%arg0: i32, %arg1: i32, %arg2: memref<1x128x32xbf16, #tpu.memory_space<vmem>>, %arg3: memref<1x64x128xbf16, #tpu.memory_space<vmem>>, %arg4: memref<32x32xbf16, #tpu.memory_space<vmem>>, %arg5: memref<1x32xf32, #tpu.memory_space<vmem>>, %arg6: memref<128x32xbf16, #tpu.memory_space<vmem>>, %arg7: memref<1x32xf32, #tpu.memory_space<vmem>>, %arg8: memref<1x32xf32, #tpu.memory_space<vmem>>, %arg9: memref<1x32xf32, #tpu.memory_space<vmem>>, %arg10: memref<32x32xbf16, #tpu.memory_space<vmem>>, %arg11: memref<1x32xf32, #tpu.memory_space<vmem>>, %arg12: memref<32x32xbf16, #tpu.memory_space<vmem>>, %arg13: memref<1x32xf32, #tpu.memory_space<vmem>>, %arg14: memref<32x32xbf16, #tpu.memory_space<vmem>>, %arg15: memref<1x32xf32, #tpu.memory_space<vmem>>, %arg16: memref<1x128x32xf32, #tpu.memory_space<vmem>>, %arg17: memref<64x32xbf16, #tpu.memory_space<vmem>>, %arg18: memref<64x32xbf16, #tpu.memory_space<vmem>>, %arg19: memref<128x32xf32, #tpu.memory_space<vmem>>) attributes {dimension_semantics = [#tpu.dimension_semantics<parallel>, #tpu.dimension_semantics<arbitrary>], iteration_bounds = array<i64: 2, 2>, scalar_prefetch = 0 : i64, scratch_operands = 3 : i64, tpu.core_type = #tpu.core_type<tc>, window_params = [{transform_indices = @transform_0, window_bounds = array<i64: 1, 128, 32>}, {transform_indices = @transform_1, window_bounds = array<i64: 1, 64, 128>}, {pipeline_mode = #tpu.pipeline_mode<synchronous>, transform_indices = @transform_2, window_bounds = array<i64: 32, 32>}, {pipeline_mode = #tpu.pipeline_mode<synchronous>, transform_indices = @transform_3, window_bounds = array<i64: 1, 32>}, {pipeline_mode = #tpu.pipeline_mode<synchronous>, transform_indices = @transform_4, window_bounds = array<i64: 128, 32>}, {pipeline_mode = #tpu.pipeline_mode<synchronous>, transform_indices = @transform_5, window_bounds = array<i64: 1, 32>}, {pipeline_mode = #tpu.pipeline_mode<synchronous>, transform_indices = @transform_6, window_bounds = array<i64: 1, 32>}, {pipeline_mode = #tpu.pipeline_mode<synchronous>, transform_indices = @transform_7, window_bounds = array<i64: 1, 32>}, {pipeline_mode = #tpu.pipeline_mode<synchronous>, transform_indices = @transform_8, window_bounds = array<i64: 32, 32>}, {pipeline_mode = #tpu.pipeline_mode<synchronous>, transform_indices = @transform_9, window_bounds = array<i64: 1, 32>}, {pipeline_mode = #tpu.pipeline_mode<synchronous>, transform_indices = @transform_10, window_bounds = array<i64: 32, 32>}, {pipeline_mode = #tpu.pipeline_mode<synchronous>, transform_indices = @transform_11, window_bounds = array<i64: 1, 32>}, {pipeline_mode = #tpu.pipeline_mode<synchronous>, transform_indices = @transform_12, window_bounds = array<i64: 32, 32>}, {pipeline_mode = #tpu.pipeline_mode<synchronous>, transform_indices = @transform_13, window_bounds = array<i64: 1, 32>}, {transform_indices = @transform_14, window_bounds = array<i64: 1, 128, 32>}]} {
    %c0_i32 = arith.constant 0 : i32
    %0 = arith.cmpi eq, %arg1, %c0_i32 : i32
    %1 = arith.extui %0 : i1 to i32
    %c0_i32_0 = arith.constant 0 : i32
    %2 = arith.cmpi ne, %1, %c0_i32_0 : i32
    scf.if %2 {
      %c0_32 = arith.constant 0 : index
      %c0_33 = arith.constant 0 : index
      %c0_34 = arith.constant 0 : index
      %61 = vector.load %arg3[%c0_32, %c0_33, %c0_34] : memref<1x64x128xbf16, #tpu.memory_space<vmem>>, vector<1x64x128xbf16>
      %62 = vector.shape_cast %61 : vector<1x64x128xbf16> to vector<64x128xbf16>
      %c0_35 = arith.constant 0 : index
      %c0_36 = arith.constant 0 : index
      %63 = vector.load %arg6[%c0_35, %c0_36] : memref<128x32xbf16, #tpu.memory_space<vmem>>, vector<128x32xbf16>
      %cst_37 = arith.constant dense<0.000000e+00> : vector<64x32xf32>
      %64 = tpu.matmul %62, %63, %cst_37 {dimension_numbers = #tpu.dot_dimension_numbers<[1], [0], [0], [1], [0, 0, 1, 1], [], []>} : vector<64x128xbf16>, vector<128x32xbf16>, vector<64x32xf32> -> vector<64x32xf32>
      %c0_38 = arith.constant 0 : index
      %c0_39 = arith.constant 0 : index
      %65 = vector.load %arg7[%c0_38, %c0_39] : memref<1x32xf32, #tpu.memory_space<vmem>>, vector<1x32xf32>
      %66 = vector.shape_cast %65 : vector<1x32xf32> to vector<32xf32>
      %67 = vector.shape_cast %66 : vector<32xf32> to vector<1x32xf32>
      %68 = vector.broadcast %67 : vector<1x32xf32> to vector<64x32xf32>
      %69 = arith.addf %64, %68 : vector<64x32xf32>
      %cst_40 = arith.constant dense<0.000000e+00> : vector<64xf32>
      %70 = vector.multi_reduction <add>, %69, %cst_40 [1] : vector<64x32xf32> to vector<64xf32>
      %71 = vector.shape_cast %70 : vector<64xf32> to vector<64x1xf32>
      %cst_41 = arith.constant 3.200000e+01 : f32
      %72 = vector.broadcast %cst_41 : f32 to vector<64x1xf32>
      %73 = arith.divf %71, %72 : vector<64x1xf32>
      %74 = vector.broadcast %73 : vector<64x1xf32> to vector<64x32xf32>
      %75 = arith.subf %69, %74 : vector<64x32xf32>
      %76 = arith.mulf %75, %75 : vector<64x32xf32>
      %cst_42 = arith.constant dense<0.000000e+00> : vector<64xf32>
      %77 = vector.multi_reduction <add>, %76, %cst_42 [1] : vector<64x32xf32> to vector<64xf32>
      %78 = vector.shape_cast %77 : vector<64xf32> to vector<64x1xf32>
      %cst_43 = arith.constant 3.200000e+01 : f32
      %79 = vector.broadcast %cst_43 : f32 to vector<64x1xf32>
      %80 = arith.divf %78, %79 : vector<64x1xf32>
      %81 = vector.broadcast %73 : vector<64x1xf32> to vector<64x32xf32>
      %82 = arith.subf %69, %81 : vector<64x32xf32>
      %cst_44 = arith.constant 9.99999974E-6 : f32
      %83 = vector.broadcast %cst_44 : f32 to vector<64x1xf32>
      %84 = arith.addf %80, %83 : vector<64x1xf32>
      %85 = math.rsqrt %84 : vector<64x1xf32>
      %86 = vector.broadcast %85 : vector<64x1xf32> to vector<64x32xf32>
      %87 = arith.mulf %82, %86 : vector<64x32xf32>
      %c0_45 = arith.constant 0 : index
      %c0_46 = arith.constant 0 : index
      %88 = vector.load %arg8[%c0_45, %c0_46] : memref<1x32xf32, #tpu.memory_space<vmem>>, vector<1x32xf32>
      %89 = vector.shape_cast %88 : vector<1x32xf32> to vector<32xf32>
      %90 = vector.shape_cast %89 : vector<32xf32> to vector<1x32xf32>
      %91 = vector.broadcast %90 : vector<1x32xf32> to vector<64x32xf32>
      %92 = arith.mulf %87, %91 : vector<64x32xf32>
      %c0_47 = arith.constant 0 : index
      %c0_48 = arith.constant 0 : index
      %93 = vector.load %arg9[%c0_47, %c0_48] : memref<1x32xf32, #tpu.memory_space<vmem>>, vector<1x32xf32>
      %94 = vector.shape_cast %93 : vector<1x32xf32> to vector<32xf32>
      %95 = vector.shape_cast %94 : vector<32xf32> to vector<1x32xf32>
      %96 = vector.broadcast %95 : vector<1x32xf32> to vector<64x32xf32>
      %97 = arith.addf %92, %96 : vector<64x32xf32>
      %98 = arith.truncf %97 : vector<64x32xf32> to vector<64x32xbf16>
      %c0_49 = arith.constant 0 : index
      %c0_50 = arith.constant 0 : index
      %99 = vector.load %arg10[%c0_49, %c0_50] : memref<32x32xbf16, #tpu.memory_space<vmem>>, vector<32x32xbf16>
      %cst_51 = arith.constant dense<0.000000e+00> : vector<64x32xf32>
      %100 = tpu.matmul %98, %99, %cst_51 {dimension_numbers = #tpu.dot_dimension_numbers<[1], [0], [0], [1], [0, 0, 1, 1], [], []>} : vector<64x32xbf16>, vector<32x32xbf16>, vector<64x32xf32> -> vector<64x32xf32>
      %c0_52 = arith.constant 0 : index
      %c0_53 = arith.constant 0 : index
      %101 = vector.load %arg11[%c0_52, %c0_53] : memref<1x32xf32, #tpu.memory_space<vmem>>, vector<1x32xf32>
      %102 = vector.shape_cast %101 : vector<1x32xf32> to vector<32xf32>
      %103 = vector.shape_cast %102 : vector<32xf32> to vector<1x32xf32>
      %104 = vector.broadcast %103 : vector<1x32xf32> to vector<64x32xf32>
      %105 = arith.addf %100, %104 : vector<64x32xf32>
      %106 = arith.truncf %105 : vector<64x32xf32> to vector<64x32xbf16>
      %c0_54 = arith.constant 0 : index
      %c0_55 = arith.constant 0 : index
      %107 = vector.load %arg17[%c0_54, %c0_55] : memref<64x32xbf16, #tpu.memory_space<vmem>>, vector<64x32xbf16>
      tpu.vector_store %arg17[%c0_54, %c0_55], %106 {strides = array<i32>} : memref<64x32xbf16, #tpu.memory_space<vmem>>, vector<64x32xbf16>,
      %c0_56 = arith.constant 0 : index
      %c0_57 = arith.constant 0 : index
      %108 = vector.load %arg12[%c0_56, %c0_57] : memref<32x32xbf16, #tpu.memory_space<vmem>>, vector<32x32xbf16>
      %cst_58 = arith.constant dense<0.000000e+00> : vector<64x32xf32>
      %109 = tpu.matmul %98, %108, %cst_58 {dimension_numbers = #tpu.dot_dimension_numbers<[1], [0], [0], [1], [0, 0, 1, 1], [], []>} : vector<64x32xbf16>, vector<32x32xbf16>, vector<64x32xf32> -> vector<64x32xf32>
      %c0_59 = arith.constant 0 : index
      %c0_60 = arith.constant 0 : index
      %110 = vector.load %arg13[%c0_59, %c0_60] : memref<1x32xf32, #tpu.memory_space<vmem>>, vector<1x32xf32>
      %111 = vector.shape_cast %110 : vector<1x32xf32> to vector<32xf32>
      %112 = vector.shape_cast %111 : vector<32xf32> to vector<1x32xf32>
      %113 = vector.broadcast %112 : vector<1x32xf32> to vector<64x32xf32>
      %114 = arith.addf %109, %113 : vector<64x32xf32>
      %115 = arith.truncf %114 : vector<64x32xf32> to vector<64x32xbf16>
      %c0_61 = arith.constant 0 : index
      %c0_62 = arith.constant 0 : index
      %116 = vector.load %arg18[%c0_61, %c0_62] : memref<64x32xbf16, #tpu.memory_space<vmem>>, vector<64x32xbf16>
      tpu.vector_store %arg18[%c0_61, %c0_62], %115 {strides = array<i32>} : memref<64x32xbf16, #tpu.memory_space<vmem>>, vector<64x32xbf16>,
    } else {
    }
    %c0 = arith.constant 0 : index
    %c0_1 = arith.constant 0 : index
    %c0_2 = arith.constant 0 : index
    %3 = vector.load %arg2[%c0, %c0_1, %c0_2] : memref<1x128x32xbf16, #tpu.memory_space<vmem>>, vector<1x128x32xbf16>
    %4 = vector.shape_cast %3 : vector<1x128x32xbf16> to vector<128x32xbf16>
    %c0_3 = arith.constant 0 : index
    %c0_4 = arith.constant 0 : index
    %5 = vector.load %arg4[%c0_3, %c0_4] : memref<32x32xbf16, #tpu.memory_space<vmem>>, vector<32x32xbf16>
    %cst = arith.constant dense<0.000000e+00> : vector<128x32xf32>
    %6 = tpu.matmul %4, %5, %cst {dimension_numbers = #tpu.dot_dimension_numbers<[1], [0], [0], [1], [0, 0, 1, 1], [], []>} : vector<128x32xbf16>, vector<32x32xbf16>, vector<128x32xf32> -> vector<128x32xf32>
    %c0_5 = arith.constant 0 : index
    %c0_6 = arith.constant 0 : index
    %7 = vector.load %arg5[%c0_5, %c0_6] : memref<1x32xf32, #tpu.memory_space<vmem>>, vector<1x32xf32>
    %8 = vector.shape_cast %7 : vector<1x32xf32> to vector<32xf32>
    %9 = vector.shape_cast %8 : vector<32xf32> to vector<1x32xf32>
    %10 = vector.broadcast %9 : vector<1x32xf32> to vector<128x32xf32>
    %11 = arith.addf %6, %10 : vector<128x32xf32>
    %12 = arith.truncf %11 : vector<128x32xf32> to vector<128x32xbf16>
    %c0_7 = arith.constant 0 : index
    %c0_8 = arith.constant 0 : index
    %13 = vector.load %arg17[%c0_7, %c0_8] : memref<64x32xbf16, #tpu.memory_space<vmem>>, vector<64x32xbf16>
    %c0_9 = arith.constant 0 : index
    %c0_10 = arith.constant 0 : index
    %14 = vector.load %arg18[%c0_9, %c0_10] : memref<64x32xbf16, #tpu.memory_space<vmem>>, vector<64x32xbf16>
    %15 = vector.extract_strided_slice %12 {offsets = [0, 0], sizes = [128, 16], strides = [1, 1]} : vector<128x32xbf16> to vector<128x16xbf16>
    %16 = vector.extract_strided_slice %13 {offsets = [0, 0], sizes = [64, 16], strides = [1, 1]} : vector<64x32xbf16> to vector<64x16xbf16>
    %cst_11 = arith.constant dense<0.000000e+00> : vector<128x64xf32>
    %17 = tpu.matmul %15, %16, %cst_11 {dimension_numbers = #tpu.dot_dimension_numbers<[1], [1], [0], [0], [0, 0, 1, 0], [], []>} : vector<128x16xbf16>, vector<64x16xbf16>, vector<128x64xf32> -> vector<128x64xf32>
    %cst_12 = arith.constant dense<0xFF800000> : vector<128xf32>
    %18 = vector.multi_reduction <maximumf>, %17, %cst_12 [1] : vector<128x64xf32> to vector<128xf32>
    %19 = vector.shape_cast %18 : vector<128xf32> to vector<128x1xf32>
    %20 = vector.broadcast %19 : vector<128x1xf32> to vector<128x64xf32>
    %21 = arith.subf %17, %20 : vector<128x64xf32>
    %22 = math.exp %21 : vector<128x64xf32>
    %cst_13 = arith.constant dense<0.000000e+00> : vector<128xf32>
    %23 = vector.multi_reduction <add>, %22, %cst_13 [1] : vector<128x64xf32> to vector<128xf32>
    %24 = vector.shape_cast %23 : vector<128xf32> to vector<128x1xf32>
    %25 = tpu.reciprocal %24 {approx = true} : vector<128x1xf32> -> vector<128x1xf32>
    %26 = vector.broadcast %25 : vector<128x1xf32> to vector<128x64xf32>
    %27 = arith.mulf %22, %26 : vector<128x64xf32>
    %28 = arith.truncf %27 : vector<128x64xf32> to vector<128x64xbf16>
    %29 = vector.extract_strided_slice %14 {offsets = [0, 0], sizes = [64, 16], strides = [1, 1]} : vector<64x32xbf16> to vector<64x16xbf16>
    %cst_14 = arith.constant dense<0.000000e+00> : vector<128x16xf32>
    %30 = tpu.matmul %28, %29, %cst_14 {dimension_numbers = #tpu.dot_dimension_numbers<[1], [0], [0], [1], [0, 0, 1, 1], [], []>} : vector<128x64xbf16>, vector<64x16xbf16>, vector<128x16xf32> -> vector<128x16xf32>
    %c0_15 = arith.constant 0 : index
    %c0_16 = arith.constant 0 : index
    %31 = vector.load %arg19[%c0_15, %c0_16] : memref<128x32xf32, #tpu.memory_space<vmem>>, vector<128x16xf32>
    tpu.vector_store %arg19[%c0_15, %c0_16], %30 {strides = array<i32>} : memref<128x32xf32, #tpu.memory_space<vmem>>, vector<128x16xf32>,
    %32 = vector.extract_strided_slice %12 {offsets = [0, 16], sizes = [128, 16], strides = [1, 1]} : vector<128x32xbf16> to vector<128x16xbf16>
    %33 = vector.extract_strided_slice %13 {offsets = [0, 16], sizes = [64, 16], strides = [1, 1]} : vector<64x32xbf16> to vector<64x16xbf16>
    %cst_17 = arith.constant dense<0.000000e+00> : vector<128x64xf32>
    %34 = tpu.matmul %32, %33, %cst_17 {dimension_numbers = #tpu.dot_dimension_numbers<[1], [1], [0], [0], [0, 0, 1, 0], [], []>} : vector<128x16xbf16>, vector<64x16xbf16>, vector<128x64xf32> -> vector<128x64xf32>
    %cst_18 = arith.constant dense<0xFF800000> : vector<128xf32>
    %35 = vector.multi_reduction <maximumf>, %34, %cst_18 [1] : vector<128x64xf32> to vector<128xf32>
    %36 = vector.shape_cast %35 : vector<128xf32> to vector<128x1xf32>
    %37 = vector.broadcast %36 : vector<128x1xf32> to vector<128x64xf32>
    %38 = arith.subf %34, %37 : vector<128x64xf32>
    %39 = math.exp %38 : vector<128x64xf32>
    %cst_19 = arith.constant dense<0.000000e+00> : vector<128xf32>
    %40 = vector.multi_reduction <add>, %39, %cst_19 [1] : vector<128x64xf32> to vector<128xf32>
    %41 = vector.shape_cast %40 : vector<128xf32> to vector<128x1xf32>
    %42 = tpu.reciprocal %41 {approx = true} : vector<128x1xf32> -> vector<128x1xf32>
    %43 = vector.broadcast %42 : vector<128x1xf32> to vector<128x64xf32>
    %44 = arith.mulf %39, %43 : vector<128x64xf32>
    %45 = arith.truncf %44 : vector<128x64xf32> to vector<128x64xbf16>
    %46 = vector.extract_strided_slice %14 {offsets = [0, 16], sizes = [64, 16], strides = [1, 1]} : vector<64x32xbf16> to vector<64x16xbf16>
    %cst_20 = arith.constant dense<0.000000e+00> : vector<128x16xf32>
    %47 = tpu.matmul %45, %46, %cst_20 {dimension_numbers = #tpu.dot_dimension_numbers<[1], [0], [0], [1], [0, 0, 1, 1], [], []>} : vector<128x64xbf16>, vector<64x16xbf16>, vector<128x16xf32> -> vector<128x16xf32>
    %c0_21 = arith.constant 0 : index
    %c16 = arith.constant 16 : index
    %48 = vector.load %arg19[%c0_21, %c16] : memref<128x32xf32, #tpu.memory_space<vmem>>, vector<128x16xf32>
    tpu.vector_store %arg19[%c0_21, %c16], %47 {strides = array<i32>} : memref<128x32xf32, #tpu.memory_space<vmem>>, vector<128x16xf32>,
    %c0_22 = arith.constant 0 : index
    %c0_23 = arith.constant 0 : index
    %49 = vector.load %arg19[%c0_22, %c0_23] : memref<128x32xf32, #tpu.memory_space<vmem>>, vector<128x32xf32>
    %50 = arith.truncf %49 : vector<128x32xf32> to vector<128x32xbf16>
    %c0_24 = arith.constant 0 : index
    %c0_25 = arith.constant 0 : index
    %51 = vector.load %arg14[%c0_24, %c0_25] : memref<32x32xbf16, #tpu.memory_space<vmem>>, vector<32x32xbf16>
    %cst_26 = arith.constant dense<0.000000e+00> : vector<128x32xf32>
    %52 = tpu.matmul %50, %51, %cst_26 {dimension_numbers = #tpu.dot_dimension_numbers<[1], [0], [0], [1], [0, 0, 1, 1], [], []>} : vector<128x32xbf16>, vector<32x32xbf16>, vector<128x32xf32> -> vector<128x32xf32>
    %c0_27 = arith.constant 0 : index
    %c0_28 = arith.constant 0 : index
    %53 = vector.load %arg15[%c0_27, %c0_28] : memref<1x32xf32, #tpu.memory_space<vmem>>, vector<1x32xf32>
    %54 = vector.shape_cast %53 : vector<1x32xf32> to vector<32xf32>
    %55 = vector.shape_cast %54 : vector<32xf32> to vector<1x32xf32>
    %56 = vector.broadcast %55 : vector<1x32xf32> to vector<128x32xf32>
    %57 = arith.addf %52, %56 : vector<128x32xf32>
    %c0_29 = arith.constant 0 : index
    %c0_30 = arith.constant 0 : index
    %c0_31 = arith.constant 0 : index
    %58 = vector.load %arg16[%c0_29, %c0_30, %c0_31] : memref<1x128x32xf32, #tpu.memory_space<vmem>>, vector<1x128x32xf32>
    %59 = vector.shape_cast %58 : vector<1x128x32xf32> to vector<128x32xf32>
    %60 = vector.shape_cast %57 : vector<128x32xf32> to vector<1x128x32xf32>
    tpu.vector_store %arg16[%c0_29, %c0_30, %c0_31], %60 {strides = array<i32>} : memref<1x128x32xf32, #tpu.memory_space<vmem>>, vector<1x128x32xf32>,
    return
  }
  func.func @transform_0(%arg0: i32, %arg1: i32) -> (i32, i32, i32) {
    %c0_i32 = arith.constant 0 : i32
    %c0_i32_0 = arith.constant 0 : i32
    return %arg0, %arg1, %c0_i32 : i32, i32, i32
  }
  func.func @transform_1(%arg0: i32, %arg1: i32) -> (i32, i32, i32) {
    %c0_i32 = arith.constant 0 : i32
    %c0_i32_0 = arith.constant 0 : i32
    %c0_i32_1 = arith.constant 0 : i32
    return %arg0, %c0_i32, %c0_i32_0 : i32, i32, i32
  }
  func.func @transform_2(%arg0: i32, %arg1: i32) -> (i32, i32) {
    %c0_i32 = arith.constant 0 : i32
    %c0_i32_0 = arith.constant 0 : i32
    %c0_i32_1 = arith.constant 0 : i32
    return %c0_i32, %c0_i32_0 : i32, i32
  }
  func.func @transform_3(%arg0: i32, %arg1: i32) -> (i32, i32) {
    %c0_i32 = arith.constant 0 : i32
    %c0_i32_0 = arith.constant 0 : i32
    %c0_i32_1 = arith.constant 0 : i32
    return %c0_i32, %c0_i32_0 : i32, i32
  }
  func.func @transform_4(%arg0: i32, %arg1: i32) -> (i32, i32) {
    %c0_i32 = arith.constant 0 : i32
    %c0_i32_0 = arith.constant 0 : i32
    %c0_i32_1 = arith.constant 0 : i32
    return %c0_i32, %c0_i32_0 : i32, i32
  }
  func.func @transform_5(%arg0: i32, %arg1: i32) -> (i32, i32) {
    %c0_i32 = arith.constant 0 : i32
    %c0_i32_0 = arith.constant 0 : i32
    %c0_i32_1 = arith.constant 0 : i32
    return %c0_i32, %c0_i32_0 : i32, i32
  }
  func.func @transform_6(%arg0: i32, %arg1: i32) -> (i32, i32) {
    %c0_i32 = arith.constant 0 : i32
    %c0_i32_0 = arith.constant 0 : i32
    %c0_i32_1 = arith.constant 0 : i32
    return %c0_i32, %c0_i32_0 : i32, i32
  }
  func.func @transform_7(%arg0: i32, %arg1: i32) -> (i32, i32) {
    %c0_i32 = arith.constant 0 : i32
    %c0_i32_0 = arith.constant 0 : i32
    %c0_i32_1 = arith.constant 0 : i32
    return %c0_i32, %c0_i32_0 : i32, i32
  }
  func.func @transform_8(%arg0: i32, %arg1: i32) -> (i32, i32) {
    %c0_i32 = arith.constant 0 : i32
    %c0_i32_0 = arith.constant 0 : i32
    %c0_i32_1 = arith.constant 0 : i32
    return %c0_i32, %c0_i32_0 : i32, i32
  }
  func.func @transform_9(%arg0: i32, %arg1: i32) -> (i32, i32) {
    %c0_i32 = arith.constant 0 : i32
    %c0_i32_0 = arith.constant 0 : i32
    %c0_i32_1 = arith.constant 0 : i32
    return %c0_i32, %c0_i32_0 : i32, i32
  }
  func.func @transform_10(%arg0: i32, %arg1: i32) -> (i32, i32) {
    %c0_i32 = arith.constant 0 : i32
    %c0_i32_0 = arith.constant 0 : i32
    %c0_i32_1 = arith.constant 0 : i32
    return %c0_i32, %c0_i32_0 : i32, i32
  }
  func.func @transform_11(%arg0: i32, %arg1: i32) -> (i32, i32) {
    %c0_i32 = arith.constant 0 : i32
    %c0_i32_0 = arith.constant 0 : i32
    %c0_i32_1 = arith.constant 0 : i32
    return %c0_i32, %c0_i32_0 : i32, i32
  }
  func.func @transform_12(%arg0: i32, %arg1: i32) -> (i32, i32) {
    %c0_i32 = arith.constant 0 : i32
    %c0_i32_0 = arith.constant 0 : i32
    %c0_i32_1 = arith.constant 0 : i32
    return %c0_i32, %c0_i32_0 : i32, i32
  }
  func.func @transform_13(%arg0: i32, %arg1: i32) -> (i32, i32) {
    %c0_i32 = arith.constant 0 : i32
    %c0_i32_0 = arith.constant 0 : i32
    %c0_i32_1 = arith.constant 0 : i32
    return %c0_i32, %c0_i32_0 : i32, i32
  }
  func.func @transform_14(%arg0: i32, %arg1: i32) -> (i32, i32, i32) {
    %c0_i32 = arith.constant 0 : i32
    %c0_i32_0 = arith.constant 0 : i32
    return %arg0, %arg1, %c0_i32 : i32, i32, i32
  }
}

</mosaic_0001>

<bundles_post_ra>
// kernel: tpu_custom_call.1
= control target key start
LH: loop header
LB: loop body
LE: loop exit
PB: predicated region body
PF: predicated region fallthrough
CT: control target
= control target key end

     0   :  { %s3458_s29 = smov 0   ;;  %s3460_s30 = smov 0   ;;  %s4202_s0 = inlined_call_operand.vmem [shape: bf16[2,256,32], index: 0, kind: input, shape index: {}]   ;;  %s4203_s1 = inlined_call_operand.vmem [shape: bf16[2,64,128], index: 1, kind: input, shape index: {}]   ;;  %s4204_s2 = inlined_call_operand.vmem [shape: bf16[32,32], index: 2, kind: input, shape index: {}]   ;;  %s4205_s3 = inlined_call_operand.vmem [shape: f32[1,32], index: 3, kind: input, shape index: {}]   ;;  %s4206_s4 = inlined_call_operand.vmem [shape: bf16[128,32], index: 4, kind: input, shape index: {}]   ;;  %s4207_s5 = inlined_call_operand.vmem [shape: f32[1,32], index: 5, kind: input, shape index: {}]   ;;  %s4208_s6 = inlined_call_operand.vmem [shape: f32[1,32], index: 6, kind: input, shape index: {}]   ;;  %s4209_s7 = inlined_call_operand.vmem [shape: f32[1,32], index: 7, kind: input, shape index: {}]   ;;  %s4210_s8 = inlined_call_operand.vmem [shape: bf16[32,32], index: 8, kind: input, shape index: {}]   ;;  %s4211_s9 = inlined_call_operand.vmem [shape: f32[1,32], index: 9, kind: input, shape index: {}]   ;;  %s4212_s10 = inlined_call_operand.vmem [shape: bf16[32,32], index: 10, kind: input, shape index: {}]   ;;  %s4213_s11 = inlined_call_operand.vmem [shape: f32[1,32], index: 11, kind: input, shape index: {}]   ;;  %s4214_s12 = inlined_call_operand.vmem [shape: bf16[32,32], index: 12, kind: input, shape index: {}]   ;;  %s4215_s13 = inlined_call_operand.vmem [shape: f32[1,32], index: 13, kind: input, shape index: {}]   ;;  %s4216_s14 = inlined_call_operand.vmem [shape: f32[2,256,32], index: 14, kind: output, shape index: {}]  }
   0x1   :  { %s3462_s15 = smov 0   ;;  %s3464_s16 = smov 0  }
   0x2   :  { %s3466_s17 = smov 0  }
   0x3 LB: > { %4220 = sst [smem:[#allocation5_spill]] %s3371_s15  ;;  %s33_s18 = sadd.s32 1, %s3371_s15  ;;  %s3379_s17 = sphi %s3466_s17, %s24_s17   ;;  %s3375_s16 = sphi %s3464_s16, %s4229_s16   ;;  %s3371_s15 = sphi %s3462_s15, %s4228_s15   ;;  %s3367_s30 = sphi %s3460_s30, %s4227_s30   ;;  %s3363_s29 = sphi %s3458_s29, %s4226_s29  }
   0x4   : > { %4221 = sst [smem:[#allocation6_spill]] %s3375_s16  ;;  %s36_s19 = sadd.s32 1, %s3375_s16 }
   0x5   : > { %4222 = sst [smem:[#allocation7_spill]] %s3379_s17  ;;  %p34_p0 = scmp.ge.s32.totalorder %s33_s18, 2 }
   0x6   : > { %p2687_p1 = scmp.ge.s32.totalorder %s3379_s17, 1  ;;  %p443_p2 = scmp.lt.s32.totalorder %s3379_s17, 5 }
   0x7   : > { %s4231_s18 = smov (%p34_p0, %s33_s18), 0  ;;  %s4233_s19 = smov (!%p34_p0, %s36_s19), %s3375_s16 }
   0x8   : > { %4223 = sst [smem:[#allocation8_spill]] %s4231_s18  ;;  %p444_p3 = pnand %p2687_p1, %p443_p2 }
   0x9   : > { %p38_p4 = scmp.ge.s32.totalorder %s4233_s19, 2  ;;  %s2688_s20 = sshll.u32 (!%p444_p3), %s3363_s29, 4 }
   0xa   : > { %447 = sbr.rel (%p444_p3) target bundleno = 2249 (0x8c9), region = 76  ;;  %p503_p5 = scmp.lt.s32.totalorder (!%p444_p3), %s3367_s30, 1 }
   0xb   : > { %s4235_s19 = smov (%p38_p4, %s4233_s19), 0  ;;  %p505_p6 = scmp.lt.s32.totalorder (!%p444_p3), %s2688_s20, 31 }
   0xc   : > { %4224 = sst [smem:[#allocation9_spill]] %s4235_s19  ;;  %p2696_p7 = scmp.ne.s32.totalorder (!%p444_p3), %s3363_s29, 0 }
   0xf   : > { %s4237_s30 = smov (!%p503_p5, %s3367_s30), 1  ;;  %s4239_s20 = smov (!%p505_p6, %s2688_s20), 31 }
  0x10   : > { %s2689_s21 = sshll.u32 %s4237_s30, 5  ;;  %531 = sbr.rel (%p2696_p7) target bundleno = 797 (0x31d), region = 80 }
  0x11   : > { %s508_s22 = sadd.s32 %s2689_s21, %s4239_s20  ;;  %s3491_s25 = scalar_lea.vmem %s4203_s1, %s2689_s21 }
  0x12   : > { %s2690_s26 = sshll.u32 %s508_s22, 2  ;;  %s2695_s27 = sshll.u32 %s508_s22, 3 }
  0x13   : > { %s3496_s16 = scalar_lea.vmem %s4202_s0, %s2690_s26  ;;  %s3501_s17 = scalar_lea.vmem %s4216_s14, %s2695_s27 }
  0x15   : > { %v3161_v0 = vld [vmem:[%s4206_s4 + $0x38] sm:$0xff]   ;;  %v3162_v1 = vld [vmem:[%s4206_s4 + $0x30] sm:$0xff]   ;;  %v3163_v2 = vld [vmem:[%s4206_s4 + $0x28] sm:$0xff]   ;;  %vm700_vm0 = vcmask 261120   ;;  %vm972_vm1 = vcmask 257024  }
  0x16   : > { %2923 = vmatprep.subr.bf16.mxu0 %v3161_v0  ;;  %v3164_v3 = vld [vmem:[%s4206_s4 + $0x20] sm:$0xff]   ;;  %v3165_v5 = vld [vmem:[%s4206_s4 + $0x18] sm:$0xff]   ;;  %v3166_v6 = vld [vmem:[%s4206_s4 + $0x10] sm:$0xff]  }
  0x17   : > { %2924 = vmatpush3.bf16.msra.mxu0 %v3161_v0  ;;  %v3169_v4 = vld [vmem:[%s3491_s25] sm:$0xff]   ;;  %v3167_v7 = vld [vmem:[%s4206_s4 + $0x8] sm:$0xff]   ;;  %v3171_v10 = vld [vmem:[%s3491_s25 + $0x10] sm:$0xff]  }
  0x18   : > { %2925 = vmatprep.subr.bf16.mxu0 %v3162_v1  ;;  %2939 = vmatprep.mubr.bf16.mxu0 %v3169_v4  ;;  %v3168_v8 = vld [vmem:[%s4206_s4] sm:$0xff]   ;;  %v3170_v9 = vld [vmem:[%s3491_s25 + $0x8] sm:$0xff]   ;;  %v3172_v11 = vld [vmem:[%s3491_s25 + $0x18] sm:$0xff]  }
  0x19   : > { %v2697_v12 = vld [vmem:[%s4207_s5] ss:$0 sm:$0xff] }
  0x1b   : > { %2926 = vmatpush3.bf16.msra.mxu0 %v3162_v1 }
  0x1c   : > { %2927 = vmatprep.subr.bf16.mxu0 %v3163_v2 }
  0x1f   : > { %2928 = vmatpush3.bf16.msra.mxu0 %v3163_v2 }
  0x20   : > { %2929 = vmatprep.subr.bf16.mxu0 %v3164_v3 }
  0x23   : > { %2930 = vmatpush3.bf16.msra.mxu0 %v3164_v3 }
  0x24   : > { %2931 = vmatprep.subr.bf16.mxu0 %v3165_v5 }
  0x27   : > { %2932 = vmatpush3.bf16.msra.mxu0 %v3165_v5 }
  0x28   : > { %2933 = vmatprep.subr.bf16.mxu0 %v3166_v6 }
  0x2b   : > { %2934 = vmatpush3.bf16.msra.mxu0 %v3166_v6 }
  0x2c   : > { %2935 = vmatprep.subr.bf16.mxu0 %v3167_v7 }
  0x2f   : > { %2936 = vmatpush3.bf16.msra.mxu0 %v3167_v7 }
  0x30   : > { %2937 = vmatprep.subr.bf16.mxu0 %v3168_v8 }
  0x33   : > { %2938 = vmatpush3.bf16.msra.mxu0 %v3168_v8 }
  0x36   : > { %2940 = vmatmul.mubr.bf16.vlgmr.msra.gmra.mxu0 %v3170_v9 }
  0x37   : > { %2943 = vmatprep.mubr.bf16.mxu0 %v3171_v10 }
  0x3e   : > { %2944 = vmatmul.mubr.bf16.gmra.mxu0 %v3172_v11 }
  0xf6   : > { %v2941_v13 = vpop.f32.mrf.mxu0 }
  0xf7   : > { %v678_v14 = vadd.f32 %v2941_v13, %v2697_v12  ;;  %v3173_v13 = vld [vmem:[%s4210_s8 + $0x8] sm:$0xff]  }
  0xf8   : > { %v669_v15 = vpop.f32.mrf.mxu0  ;;  %2947 = vmatprep.subr.bf16.mxu1 %v3173_v13 }
  0xf9   : > { %v670_v16 = vadd.f32 %v2697_v12, %v669_v15  ;;  %v707_v17 = vsel %vm700_vm0, %v678_v14, 0.0  ;;  %2948 = vmatpush3.bf16.msra.mxu1 %v3173_v13  ;;  %v3591_v15 = vld [vmem:[%s4212_s10 + $0x8] sm:$0xff]  }
  0xfa   : > { %708 = vadd.xlane.f32.xlu1 %v707_v17  ;;  %v2942_v18 = vpop.f32.mrf.mxu0 }
  0xfb   : > { %v681_v19 = vadd.f32 %v2942_v18, %v2697_v12  ;;  %v701_v20 = vsel %vm700_vm0, %v670_v16, 0.0 }
  0xfc   : > { %v672_v21 = vpop.f32.mrf.mxu0  ;;  %702 = vadd.xlane.f32.xlu0 %v701_v20 }
  0xfd   : > { %v673_v22 = vadd.f32 %v2697_v12, %v672_v21  ;;  %v710_v23 = vsel %vm700_vm0, %v681_v19, 0.0 }
  0xfe   : > { %711 = vadd.xlane.f32.xlu1 %v710_v23  ;;  %v2945_v24 = vpop.f32.mrf.mxu0 }
  0xff   : > { %v704_v25 = vsel %vm700_vm0, %v673_v22, 0.0  ;;  %v694_v29 = vadd.f32 %v2945_v24, %v2697_v12 }
 0x100   : > { %v685_v26 = vpop.f32.mrf.mxu0  ;;  %705 = vadd.xlane.f32.xlu0 %v704_v25 }
 0x101   : > { %v686_v27 = vadd.f32 %v2697_v12, %v685_v26  ;;  %v719_v35 = vsel %vm700_vm0, %v694_v29, 0.0 }
 0x102   : > { %v2946_v28 = vpop.f32.mrf.mxu0 }
 0x103   : > { %v713_v30 = vsel %vm700_vm0, %v686_v27, 0.0  ;;  %v697_v33 = vadd.f32 %v2946_v28, %v2697_v12 }
 0x104   : > { %v688_v31 = vpop.f32.mrf.mxu0  ;;  %714 = vadd.xlane.f32.xlu0 %v713_v30 }
 0x105   : > { %v689_v32 = vadd.f32 %v2697_v12, %v688_v31  ;;  %v722_v36 = vsel %vm700_vm0, %v697_v33, 0.0 }
 0x107   : > { %v716_v34 = vsel %vm700_vm0, %v689_v32, 0.0 }
 0x108   : > { %717 = vadd.xlane.f32.xlu1 %v716_v34  ;;  %720 = vadd.xlane.f32.xlu0 %v719_v35 }
 0x10c   : > { %723 = vadd.xlane.f32.xlu1 %v722_v36 }
 0x183   : > { %v709_v37 = vpop.xlane.xlu1 %708 }
 0x184   : > { %v728_v38 = vmul.f32 0.03125, %v709_v37 }
 0x185   : > { %v703_v39 = vpop.xlane.xlu0 %702 }
 0x186   : > { %v726_v40 = vmul.f32 0.03125, %v703_v39  ;;  %v3542_v42 = vsub.f32 %v678_v14, %v728_v38  ;;  %v3174_v14 = vld [vmem:[%s4210_s8] sm:$0xff]  }
 0x187   : > { %v712_v41 = vpop.xlane.xlu1 %711  ;;  %2949 = vmatprep.subr.bf16.mxu1 %v3174_v14 }
 0x188   : > { %v3544_v43 = vsub.f32 %v670_v16, %v726_v40  ;;  %v729_v44 = vmul.f32 0.03125, %v712_v41  ;;  %v744_v51 = vmul.f32 %v3542_v42, %v3542_v42  ;;  %2950 = vmatpush3.bf16.msra.mxu1 %v3174_v14 }
 0x189   : > { %v706_v45 = vpop.xlane.xlu0 %705  ;;  %2959 = vmatprep.subr.bf16.mxu1 %v3591_v15 }
 0x18a   : > { %v727_v46 = vmul.f32 0.03125, %v706_v45  ;;  %v742_v47 = vmul.f32 %v3544_v43, %v3544_v43  ;;  %v3548_v48 = vsub.f32 %v681_v19, %v729_v44  ;;  %v756_v56 = vsel %vm700_vm0, %v744_v51, 0.0  ;;  %v2710_v44 = vld [vmem:[%s4208_s6] ss:$0 sm:$0xff] }
 0x18b   : > { %v2711_v51 = vld [vmem:[%s4209_s7] ss:$0 sm:$0xff] }
 0x18c   : > { %v3550_v49 = vsub.f32 %v673_v22, %v727_v46  ;;  %v750_v50 = vsel %vm700_vm0, %v742_v47, 0.0  ;;  %v745_v58 = vmul.f32 %v3548_v48, %v3548_v48 }
 0x18d   : > { %751 = vadd.xlane.f32.xlu0 %v750_v50  ;;  %v715_v52 = vpop.xlane.xlu0 %714 }
 0x18e   : > { %v730_v53 = vmul.f32 0.03125, %v715_v52  ;;  %v743_v54 = vmul.f32 %v3550_v49, %v3550_v49  ;;  %v759_v2 = vsel %vm700_vm0, %v745_v58, 0.0 }
 0x190   : > { %v3557_v55 = vsub.f32 %v686_v27, %v730_v53  ;;  %v753_v57 = vsel %vm700_vm0, %v743_v54, 0.0 }
 0x191   : > { %v718_v59 = vpop.xlane.xlu1 %717  ;;  %757 = vadd.xlane.f32.xlu0 %v756_v56  ;;  %754 = vadd.xlane.f32.xlu1 %v753_v57  ;;  %v721_v60 = vpop.xlane.xlu0 %720 }
 0x192   : > { %v731_v61 = vmul.f32 0.03125, %v718_v59  ;;  %v732_v62 = vmul.f32 0.03125, %v721_v60  ;;  %v746_v63 = vmul.f32 %v3557_v55, %v3557_v55 }
 0x194   : > { %v3565_v0 = vsub.f32 %v689_v32, %v731_v61  ;;  %v3567_v1 = vsub.f32 %v694_v29, %v732_v62  ;;  %v762_v3 = vsel %vm700_vm0, %v746_v63, 0.0 }
 0x195   : > { %v724_v4 = vpop.xlane.xlu1 %723  ;;  %760 = vadd.xlane.f32.xlu1 %v759_v2  ;;  %763 = vadd.xlane.f32.xlu0 %v762_v3 }
 0x196   : > { %v733_v5 = vmul.f32 0.03125, %v724_v4  ;;  %v747_v6 = vmul.f32 %v3565_v0, %v3565_v0  ;;  %v748_v7 = vmul.f32 %v3567_v1, %v3567_v1 }
 0x198   : > { %v3575_v8 = vsub.f32 %v697_v33, %v733_v5  ;;  %v765_v9 = vsel %vm700_vm0, %v747_v6, 0.0  ;;  %v768_v10 = vsel %vm700_vm0, %v748_v7, 0.0 }
 0x199   : > { %766 = vadd.xlane.f32.xlu1 %v765_v9  ;;  %769 = vadd.xlane.f32.xlu0 %v768_v10 }
 0x19a   : > { %v749_v11 = vmul.f32 %v3575_v8, %v3575_v8 }
 0x19c   : > { %v771_v12 = vsel %vm700_vm0, %v749_v11, 0.0 }
 0x19d   : > { %772 = vadd.xlane.f32.xlu1 %v771_v12 }
 0x216   : > { %v752_v16 = vpop.xlane.xlu0 %751 }
 0x217   : > { %v774_v17 = vmul.f32 0.03125, %v752_v16 }
 0x219   : > { %v782_v18 = vadd.f32 1e-05, %v774_v17 }
 0x21a   : > { %v755_v19 = vpop.xlane.xlu1 %754  ;;  %v758_v20 = vpop.xlane.xlu0 %757 }
 0x21b   : > { %3177 = vrsqrt.f32 %v782_v18  ;;  %v775_v21 = vmul.f32 0.03125, %v755_v19  ;;  %v776_v22 = vmul.f32 0.03125, %v758_v20 }
 0x21d   : > { %v783_v23 = vadd.f32 1e-05, %v775_v21  ;;  %v784_v24 = vadd.f32 1e-05, %v776_v22 }
 0x21e   : > { %v761_v25 = vpop.xlane.xlu1 %760  ;;  %v764_v26 = vpop.xlane.xlu0 %763 }
 0x21f   : > { %3179 = vrsqrt.f32 %v783_v23  ;;  %v777_v27 = vmul.f32 0.03125, %v761_v25  ;;  %v778_v28 = vmul.f32 0.03125, %v764_v26 }
 0x220   : > { %3181 = vrsqrt.f32 %v784_v24 }
 0x221   : > { %v785_v29 = vadd.f32 1e-05, %v777_v27  ;;  %v786_v30 = vadd.f32 1e-05, %v778_v28 }
 0x222   : > { %v767_v31 = vpop.xlane.xlu1 %766  ;;  %v770_v32 = vpop.xlane.xlu0 %769 }
 0x223   : > { %3183 = vrsqrt.f32 %v785_v29  ;;  %v779_v33 = vmul.f32 0.03125, %v767_v31  ;;  %v780_v34 = vmul.f32 0.03125, %v770_v32 }
 0x224   : > { %3185 = vrsqrt.f32 %v786_v30 }
 0x225   : > { %v787_v35 = vadd.f32 1e-05, %v779_v33  ;;  %v788_v36 = vadd.f32 1e-05, %v780_v34 }
 0x226   : > { %v773_v37 = vpop.xlane.xlu1 %772 }
 0x227   : > { %3187 = vrsqrt.f32 %v787_v35  ;;  %v781_v38 = vmul.f32 0.03125, %v773_v37  ;;  %v2727_v37 = vld [vmem:[%s4213_s11] ss:$0 sm:$0xff] }
 0x228   : > { %v3178_v39 = vpop.eup %3177  ;;  %3189 = vrsqrt.f32 %v788_v36 }
 0x229   : > { %v789_v40 = vadd.f32 1e-05, %v781_v38  ;;  %v798_v41 = vmul.f32 %v3178_v39, %v3544_v43 }
 0x22b   : > { %3191 = vrsqrt.f32 %v789_v40  ;;  %v813_v50 = vmul.f32 %v2710_v44, %v798_v41 }
 0x22c   : > { %v3180_v45 = vpop.eup %3179 }
 0x22d   : > { %v3182_v46 = vpop.eup %3181  ;;  %v799_v47 = vmul.f32 %v3180_v45, %v3550_v49  ;;  %v828_v43 = vadd.f32 %v2711_v51, %v813_v50 }
 0x22e   : > { %v800_v52 = vmul.f32 %v3182_v46, %v3542_v42 }
 0x22f   : > { %v814_v53 = vmul.f32 %v2710_v44, %v799_v47 }
 0x230   : > { %v3184_v54 = vpop.eup %3183  ;;  %v815_v59 = vmul.f32 %v2710_v44, %v800_v52 }
 0x231   : > { %v3186_v56 = vpop.eup %3185  ;;  %v829_v57 = vadd.f32 %v2711_v51, %v814_v53  ;;  %v801_v58 = vmul.f32 %v3184_v54, %v3548_v48  ;;  %v3176_v48 = vld [vmem:[%s4212_s10] sm:$0xff]  }
 0x232   : > { %v802_v60 = vmul.f32 %v3186_v56, %v3557_v55  ;;  %v830_v2 = vadd.f32 %v2711_v51, %v815_v59 }
 0x233   : > { %v836_v61 = vpack.c.bf16 %v829_v57, %v828_v43  ;;  %v816_v62 = vmul.f32 %v2710_v44, %v801_v58 }
 0x234   : > { %v3188_v49 = vpop.eup %3187  ;;  %v817_v4 = vmul.f32 %v2710_v44, %v802_v60 }
 0x235   : > { %v3190_v63 = vpop.eup %3189  ;;  %2951 = vmatprep.mubr.msk.bf16.mxu1 %vm700_vm0, %v836_v61  ;;  %v831_v3 = vadd.f32 %v2711_v51, %v816_v62  ;;  %v803_v42 = vmul.f32 %v3188_v49, %v3565_v0 }
 0x236   : > { %v804_v5 = vmul.f32 %v3190_v63, %v3567_v1  ;;  %v832_v9 = vadd.f32 %v2711_v51, %v817_v4 }
 0x237   : > { %v837_v6 = vpack.c.bf16 %v831_v3, %v830_v2  ;;  %v818_v7 = vmul.f32 %v2710_v44, %v803_v42 }
 0x238   : > { %v3192_v55 = vpop.eup %3191  ;;  %v819_v12 = vmul.f32 %v2710_v44, %v804_v5 }
 0x239   : > { %2952 = vmatmul.mubr.msk.bf16.vlgmr.msra.gmra.mxu1 %vm700_vm0, %v837_v6  ;;  %v833_v10 = vadd.f32 %v2711_v51, %v818_v7  ;;  %v805_v11 = vmul.f32 %v3192_v55, %v3575_v8  ;;  %v2712_v8 = vld [vmem:[%s4211_s9] ss:$0 sm:$0xff] }
 0x23a   : > { %2960 = vmatpush3.bf16.msra.mxu1 %v3591_v15  ;;  %v834_v1 = vadd.f32 %v2711_v51, %v819_v12 }
 0x23b   : > { %v838_v0 = vpack.c.bf16 %v833_v10, %v832_v9  ;;  %2961 = vmatprep.subr.bf16.mxu1 %v3176_v48  ;;  %v820_v13 = vmul.f32 %v2710_v44, %v805_v11 }
 0x23d   : > { %2955 = vmatprep.mubr.msk.bf16.mxu1 %vm700_vm0, %v838_v0  ;;  %v835_v14 = vadd.f32 %v2711_v51, %v820_v13 }
 0x23e   : > { %2962 = vmatpush3.bf16.msra.mxu1 %v3176_v48 }
 0x23f   : > { %v839_v16 = vpack.c.bf16 %v835_v14, %v834_v1 }
 0x241   : > { %2956 = vmatmul.mubr.msk.bf16.gmra.mxu1 %vm700_vm0, %v839_v16 }
 0x242   : > { %2963 = vmatprep.mubr.msk.bf16.mxu1 %vm700_vm0, %v836_v61 }
 0x249   : > { %2964 = vmatmul.mubr.msk.bf16.vlgmr.msra.gmra.mxu1 %vm700_vm0, %v837_v6 }
 0x24a   : > { %2967 = vmatprep.mubr.msk.bf16.mxu1 %vm700_vm0, %v838_v0 }
 0x251   : > { %2968 = vmatmul.mubr.msk.bf16.gmra.mxu1 %vm700_vm0, %v839_v16 }
 0x2f9   : > { %v2953_v15 = vpop.f32.mrf.mxu1 }
 0x2fa   : > { %v918_v17 = vadd.f32 %v2953_v15, %v2712_v8 }
 0x2fb   : > { %v909_v18 = vpop.f32.mrf.mxu1 }
 0x2fc   : > { %v2817_v19 = vpack.c.bf16 %v918_v17, %v918_v17  ;;  %v910_v20 = vadd.f32 %v2712_v8, %v909_v18 }
 0x2fd   : > { %v2954_v21 = vpop.f32.mrf.mxu1 }
 0x2fe   : > { %975 = vst.msk [vmem:[#allocation2 + $0x8] sm:$0xf] %vm972_vm1, %v2817_v19  ;;  %v2815_v22 = vpack.c.bf16 %v910_v20, %v910_v20  ;;  %v921_v23 = vadd.f32 %v2954_v21, %v2712_v8 }
 0x2ff   : > { %v912_v24 = vpop.f32.mrf.mxu1 }
 0x300   : > { %973 = vst.msk [vmem:[#allocation2] sm:$0xf] %vm972_vm1, %v2815_v22  ;;  %v2818_v25 = vpack.c.bf16 %v921_v23, %v921_v23  ;;  %v913_v26 = vadd.f32 %v2712_v8, %v912_v24 }
 0x301   : > { %v2957_v27 = vpop.f32.mrf.mxu1 }
 0x302   : > { %976 = vst.msk [vmem:[#allocation2 + $0xc] sm:$0xf] %vm972_vm1, %v2818_v25  ;;  %v2816_v28 = vpack.c.bf16 %v913_v26, %v913_v26  ;;  %v934_v29 = vadd.f32 %v2957_v27, %v2712_v8 }
 0x303   : > { %v925_v30 = vpop.f32.mrf.mxu1 }
 0x304   : > { %974 = vst.msk [vmem:[#allocation2 + $0x4] sm:$0xf] %vm972_vm1, %v2816_v28  ;;  %v2821_v31 = vpack.c.bf16 %v934_v29, %v934_v29  ;;  %v926_v32 = vadd.f32 %v2712_v8, %v925_v30 }
 0x305   : > { %v2958_v33 = vpop.f32.mrf.mxu1 }
 0x306   : > { %979 = vst.msk [vmem:[#allocation2 + $0x18] sm:$0xf] %vm972_vm1, %v2821_v31  ;;  %v2819_v34 = vpack.c.bf16 %v926_v32, %v926_v32  ;;  %v937_v35 = vadd.f32 %v2958_v33, %v2712_v8 }
 0x307   : > { %v928_v36 = vpop.f32.mrf.mxu1 }
 0x308   : > { %977 = vst.msk [vmem:[#allocation2 + $0x10] sm:$0xf] %vm972_vm1, %v2819_v34  ;;  %v2822_v38 = vpack.c.bf16 %v937_v35, %v937_v35  ;;  %v929_v39 = vadd.f32 %v2712_v8, %v928_v36 }
 0x309   : > { %v2965_v40 = vpop.f32.mrf.mxu1 }
 0x30a   : > { %980 = vst.msk [vmem:[#allocation2 + $0x1c] sm:$0xf] %vm972_vm1, %v2822_v38  ;;  %v2820_v41 = vpack.c.bf16 %v929_v39, %v929_v39  ;;  %v1047_v44 = vadd.f32 %v2965_v40, %v2727_v37 }
 0x30b   : > { %v1038_v45 = vpop.f32.mrf.mxu1 }
 0x30c   : > { %978 = vst.msk [vmem:[#allocation2 + $0x14] sm:$0xf] %vm972_vm1, %v2820_v41  ;;  %v2825_v46 = vpack.c.bf16 %v1047_v44, %v1047_v44  ;;  %v1039_v47 = vadd.f32 %v2727_v37, %v1038_v45 }
 0x30d   : > { %v2966_v50 = vpop.f32.mrf.mxu1 }
 0x30e   : > { %1103 = vst.msk [vmem:[#allocation3 + $0x8] sm:$0xf] %vm972_vm1, %v2825_v46  ;;  %v2823_v51 = vpack.c.bf16 %v1039_v47, %v1039_v47  ;;  %v1050_v52 = vadd.f32 %v2966_v50, %v2727_v37 }
 0x30f   : > { %v1041_v53 = vpop.f32.mrf.mxu1 }
 0x310   : > { %1101 = vst.msk [vmem:[#allocation3] sm:$0xf] %vm972_vm1, %v2823_v51  ;;  %v2826_v54 = vpack.c.bf16 %v1050_v52, %v1050_v52  ;;  %v1042_v56 = vadd.f32 %v2727_v37, %v1041_v53 }
 0x311   : > { %v2969_v43 = vpop.f32.mrf.mxu1 }
 0x312   : > { %1104 = vst.msk [vmem:[#allocation3 + $0xc] sm:$0xf] %vm972_vm1, %v2826_v54  ;;  %v2824_v57 = vpack.c.bf16 %v1042_v56, %v1042_v56  ;;  %v1063_v58 = vadd.f32 %v2969_v43, %v2727_v37 }
 0x313   : > { %v1054_v59 = vpop.f32.mrf.mxu1 }
 0x314   : > { %1102 = vst.msk [vmem:[#allocation3 + $0x4] sm:$0xf] %vm972_vm1, %v2824_v57  ;;  %v2829_v60 = vpack.c.bf16 %v1063_v58, %v1063_v58  ;;  %v1055_v61 = vadd.f32 %v2727_v37, %v1054_v59 }
 0x315   : > { %v2970_v62 = vpop.f32.mrf.mxu1 }
 0x316   : > { %1107 = vst.msk [vmem:[#allocation3 + $0x18] sm:$0xf] %vm972_vm1, %v2829_v60  ;;  %v2827_v49 = vpack.c.bf16 %v1055_v61, %v1055_v61  ;;  %v1066_v63 = vadd.f32 %v2970_v62, %v2727_v37 }
 0x317   : > { %v1057_v2 = vpop.f32.mrf.mxu1 }
 0x318   : > { %1105 = vst.msk [vmem:[#allocation3 + $0x10] sm:$0xf] %vm972_vm1, %v2827_v49  ;;  %v2830_v3 = vpack.c.bf16 %v1066_v63, %v1066_v63  ;;  %v1058_v42 = vadd.f32 %v2727_v37, %v1057_v2 }
 0x31a   : > { %1108 = vst.msk [vmem:[#allocation3 + $0x1c] sm:$0xf] %vm972_vm1, %v2830_v3  ;;  %v2828_v4 = vpack.c.bf16 %v1058_v42, %v1058_v42 }
 0x31c   : > { %1106 = vst.msk [vmem:[#allocation3 + $0x14] sm:$0xf] %vm972_vm1, %v2828_v4 }
 0x31d PF: > { %v3193_v5 = vld [vmem:[%s4204_s2 + $0x8] sm:$0xff]   ;;  %v3194_v6 = vld [vmem:[%s4204_s2] sm:$0xff]   ;;  %vm1188_vm2 = vcmask 261120   ;;  %v3197_v55 = vld [vmem:[%s3496_s16 + $0x10] sm:$0xff]   ;;  %vm1354_vm3 = vcmask 130048   ;;  %s3381_s26 = smov 112  }
 0x31e   : > { %2971 = vmatprep.subr.bf16.mxu0 %v3193_v5  ;;  %v3195_v7 = vld [vmem:[%s3496_s16] sm:$0xff]   ;;  %v3196_v48 = vld [vmem:[%s3496_s16 + $0x8] sm:$0xff]   ;;  %v3203_v9 = vld [vmem:[#allocation2 + $0x18] sm:$0xff]   ;;  %vm1488_vm4 = vcmask 523264   ;;  %vm2380_vm5 = vcmask 261248  }
 0x31f   : > { %2972 = vmatpush3.bf16.msra.mxu0 %v3193_v5  ;;  %2975 = vmatprep.mubr.msk.bf16.mxu0 %vm1188_vm2, %v3195_v7  ;;  %v3204_v10 = vld [vmem:[#allocation2 + $0x10] sm:$0xff]   ;;  %v1389_v11 = vsel %vm1354_vm3, %v3203_v9, 0  ;;  %v3205_v12 = vld [vmem:[#allocation2 + $0x8] sm:$0xff]   ;;  %v3198_v0 = vld [vmem:[%s3496_s16 + $0x18] sm:$0xff]  }
 0x320   : > { %2973 = vmatprep.subr.bf16.mxu0 %v3194_v6  ;;  %1864 = vrot.lane.b32.xlu0 %v3203_v9, %s3381_s26  ;;  %v3199_v13 = vld [vmem:[%s3496_s16 + $0x20] sm:$0xff]   ;;  %v1386_v1 = vsel %vm1354_vm3, %v3204_v10, 0  ;;  %v3200_v14 = vld [vmem:[%s3496_s16 + $0x28] sm:$0xff]   ;;  %v3201_v16 = vld [vmem:[%s3496_s16 + $0x30] sm:$0xff]   ;;  %v1383_v8 = vsel %vm1354_vm3, %v3205_v12, 0 }
 0x321   : > { %3111 = vmatprep.subr.msk.bf16.mxu1 %vm1354_vm3, %v3203_v9  ;;  %1860 = vrot.lane.b32.xlu1 %v3205_v12, %s3381_s26  ;;  %v3202_v15 = vld [vmem:[%s3496_s16 + $0x38] sm:$0xff]   ;;  %v3206_v17 = vld [vmem:[#allocation2] sm:$0xff]   ;;  %s3382_s16 = smov 16  }
 0x322   : > { %2992 = vmatpush3.bf16.xpose.msra.mxu1 %v1389_v11  ;;  %v1380_v18 = vsel %vm1354_vm3, %v3206_v17, 0  ;;  %v3680_v21 = vld [vmem:[%s4205_s3] ss:$0 sm:$0xff]  ;;  %v3207_v58 = vld [vmem:[#allocation3 + $0x18] sm:$0xff]  }
 0x323   : > { %2974 = vmatpush3.bf16.msra.mxu0 %v3194_v6  ;;  %3112 = vmatprep.subr.msk.bf16.mxu1 %vm1354_vm3, %v3204_v10  ;;  %v3208_v49 = vld [vmem:[#allocation3 + $0x10] sm:$0xff]  }
 0x324   : > { %1862 = vrot.lane.b32.xlu0 %v3204_v10, %s3381_s26  ;;  %3015 = vmatprep.subr.bf16.mxu0 %v3207_v58 }
 0x325   : > { %1858 = vrot.lane.b32.xlu1 %v3206_v17, %s3381_s26 }
 0x326   : > { %2976 = vmatmul.mubr.msk.bf16.vlgmr.msra.gmra.mxu0 %vm1188_vm2, %v3196_v48 }
 0x327   : > { %2979 = vmatprep.mubr.msk.bf16.mxu0 %vm1188_vm2, %v3197_v55  ;;  %3016 = vmatpush3.bf16.msra.mxu0 %v3207_v58 }
 0x328   : > { %3017 = vmatprep.subr.bf16.mxu0 %v3208_v49 }
 0x32a   : > { %2994 = vmatpush3.bf16.xpose.msra.mxu1 %v1386_v1 }
 0x32b   : > { %3113 = vmatprep.subr.msk.bf16.mxu1 %vm1354_vm3, %v3205_v12  ;;  %3018 = vmatpush3.bf16.msra.mxu0 %v3208_v49 }
 0x32e   : > { %2980 = vmatmul.mubr.msk.bf16.gmra.mxu0 %vm1188_vm2, %v3198_v0 }
 0x32f   : > { %2983 = vmatprep.mubr.msk.bf16.mxu0 %vm1188_vm2, %v3199_v13 }
 0x332   : > { %2996 = vmatpush3.bf16.xpose.msra.mxu1 %v1383_v8 }
 0x333   : > { %3114 = vmatprep.subr.msk.bf16.mxu1 %vm1354_vm3, %v3206_v17 }
 0x336   : > { %2984 = vmatmul.mubr.msk.bf16.gmra.mxu0 %vm1188_vm2, %v3200_v14 }
 0x337   : > { %2987 = vmatprep.mubr.msk.bf16.mxu0 %vm1188_vm2, %v3201_v16 }
 0x33a   : > { %2998 = vmatpush3.bf16.xpose.msra.mxu1 %v1380_v18 }
 0x33e   : > { %2988 = vmatmul.mubr.msk.bf16.gmra.mxu0 %vm1188_vm2, %v3202_v15 }
 0x392   : > { %v1865_v19 = vpop.permute.xlu0 %1864 }
 0x393   : > { %3115 = vmatprep.subr.msk.bf16.mxu1 %vm1354_vm3, %v1865_v19  ;;  %v1900_v33 = vsel %vm1354_vm3, %v1865_v19, 0  ;;  %v1861_v51 = vpop.permute.xlu1 %1860 }
 0x394   : > { %v1894_v62 = vsel %vm1354_vm3, %v1861_v51, 0 }
 0x396   : > { %v1863_v34 = vpop.permute.xlu0 %1862 }
 0x397   : > { %v1897_v47 = vsel %vm1354_vm3, %v1863_v34, 0  ;;  %v1859_v2 = vpop.permute.xlu1 %1858 }
 0x398   : > { %v1891_v55 = vsel %vm1354_vm3, %v1859_v2, 0 }
 0x3e6   : > { %v2977_v20 = vpop.f32.mrf.mxu0 }
 0x3e7   : > { %v1256_v24 = vadd.f32 %v2977_v20, %v3680_v21 }
 0x3e8   : > { %v1247_v22 = vpop.f32.mrf.mxu0 }
 0x3e9   : > { %v1248_v27 = vadd.f32 %v3680_v21, %v1247_v22 }
 0x3ea   : > { %v2978_v23 = vpop.f32.mrf.mxu0 }
 0x3eb   : > { %v1259_v25 = vadd.f32 %v2978_v23, %v3680_v21 }
 0x3ec   : > { %v1250_v26 = vpop.f32.mrf.mxu0 }
 0x3ed   : > { %v1311_v28 = vpack.c.bf16 %v1259_v25, %v1256_v24  ;;  %v1251_v29 = vadd.f32 %v3680_v21, %v1250_v26 }
 0x3ee   : > { %v2981_v30 = vpop.f32.mrf.mxu0 }
 0x3ef   : > { %v1310_v31 = vpack.c.bf16 %v1251_v29, %v1248_v27  ;;  %1844 = vrot.lane.b32.xlu1 %v1311_v28, %s3381_s26  ;;  %v1272_v36 = vadd.f32 %v2981_v30, %v3680_v21 }
 0x3f0   : > { %v1263_v32 = vpop.f32.mrf.mxu0 }
 0x3f1   : > { %1842 = vrot.lane.b32.xlu0 %v1310_v31, %s3381_s26  ;;  %2999 = vmatprep.mubr.msk.bf16.mxu1 %vm1354_vm3, %v1310_v31  ;;  %v1264_v39 = vadd.f32 %v3680_v21, %v1263_v32 }
 0x3f2   : > { %v2982_v35 = vpop.f32.mrf.mxu0  ;;  %3000 = vmatmul.mubr.msk.bf16.vlgmr.msra.gmra.mxu1 %vm1354_vm3, %v1311_v28 }
 0x3f3   : > { %v1275_v37 = vadd.f32 %v2982_v35, %v3680_v21  ;;  %3040 = vmatpush3.bf16.xpose.msra.mxu1 %v1900_v33 }
 0x3f4   : > { %v1266_v38 = vpop.f32.mrf.mxu0  ;;  %3116 = vmatprep.subr.msk.bf16.mxu1 %vm1354_vm3, %v1863_v34 }
 0x3f5   : > { %v1313_v40 = vpack.c.bf16 %v1275_v37, %v1272_v36  ;;  %v1267_v41 = vadd.f32 %v3680_v21, %v1266_v38 }
 0x3f6   : > { %v2985_v44 = vpop.f32.mrf.mxu0 }
 0x3f7   : > { %v1312_v45 = vpack.c.bf16 %v1267_v41, %v1264_v39  ;;  %1848 = vrot.lane.b32.xlu1 %v1313_v40, %s3381_s26  ;;  %v1288_v50 = vadd.f32 %v2985_v44, %v3680_v21 }
 0x3f8   : > { %v1279_v46 = vpop.f32.mrf.mxu0 }
 0x3f9   : > { %1846 = vrot.lane.b32.xlu0 %v1312_v45, %s3381_s26  ;;  %3003 = vmatprep.mubr.msk.bf16.mxu1 %vm1354_vm3, %v1312_v45  ;;  %v1280_v56 = vadd.f32 %v3680_v21, %v1279_v46 }
 0x3fa   : > { %v2986_v52 = vpop.f32.mrf.mxu0  ;;  %3004 = vmatmul.mubr.msk.bf16.gmra.mxu1 %vm1354_vm3, %v1313_v40 }
 0x3fb   : > { %v1291_v53 = vadd.f32 %v2986_v52, %v3680_v21  ;;  %3042 = vmatpush3.bf16.xpose.msra.mxu1 %v1897_v47 }
 0x3fc   : > { %v1282_v54 = vpop.f32.mrf.mxu0  ;;  %3117 = vmatprep.subr.msk.bf16.mxu1 %vm1354_vm3, %v1861_v51  ;;  %v3799_v51 = vld [vmem:[#allocation3] sm:$0xff]  }
 0x3fd   : > { %v1315_v43 = vpack.c.bf16 %v1291_v53, %v1288_v50  ;;  %v1283_v57 = vadd.f32 %v3680_v21, %v1282_v54  ;;  %v3795_v50 = vld [vmem:[#allocation3 + $0x8] sm:$0xff]  }
 0x3fe   : > { %v2989_v59 = vpop.f32.mrf.mxu0  ;;  %3019 = vmatprep.subr.bf16.mxu0 %v3795_v50 }
 0x3ff   : > { %v1314_v60 = vpack.c.bf16 %v1283_v57, %v1280_v56  ;;  %1852 = vrot.lane.b32.xlu1 %v1315_v43, %s3381_s26  ;;  %v1304_v63 = vadd.f32 %v2989_v59, %v3680_v21  ;;  %3020 = vmatpush3.bf16.msra.mxu0 %v3795_v50 }
 0x400   : > { %v1295_v61 = vpop.f32.mrf.mxu0  ;;  %3021 = vmatprep.subr.bf16.mxu0 %v3799_v51 }
 0x401   : > { %1850 = vrot.lane.b32.xlu0 %v1314_v60, %s3381_s26  ;;  %3007 = vmatprep.mubr.msk.bf16.mxu1 %vm1354_vm3, %v1314_v60  ;;  %v1296_v42 = vadd.f32 %v3680_v21, %v1295_v61 }
 0x402   : > { %v2990_v3 = vpop.f32.mrf.mxu0  ;;  %3008 = vmatmul.mubr.msk.bf16.gmra.mxu1 %vm1354_vm3, %v1315_v43 }
 0x403   : > { %v1307_v4 = vadd.f32 %v2990_v3, %v3680_v21  ;;  %3044 = vmatpush3.bf16.xpose.msra.mxu1 %v1894_v62  ;;  %3022 = vmatpush3.bf16.msra.mxu0 %v3799_v51 }
 0x404   : > { %v1298_v5 = vpop.f32.mrf.mxu0  ;;  %3118 = vmatprep.subr.msk.bf16.mxu1 %vm1354_vm3, %v1859_v2 }
 0x405   : > { %v1317_v6 = vpack.c.bf16 %v1307_v4, %v1304_v63  ;;  %v1299_v7 = vadd.f32 %v3680_v21, %v1298_v5 }
 0x407   : > { %v1316_v48 = vpack.c.bf16 %v1299_v7, %v1296_v42  ;;  %1856 = vrot.lane.b32.xlu1 %v1317_v6, %s3381_s26 }
 0x409   : > { %1854 = vrot.lane.b32.xlu0 %v1316_v48, %s3381_s26  ;;  %3011 = vmatprep.mubr.msk.bf16.mxu1 %vm1354_vm3, %v1316_v48 }
 0x40a   : > { %3012 = vmatmul.mubr.msk.bf16.gmra.mxu1 %vm1354_vm3, %v1317_v6 }
 0x40b   : > { %3046 = vmatpush3.bf16.xpose.msra.mxu1 %v1891_v55  ;;  %2189 = vrot.lane.b32.xlu1 %v3207_v58, %s3381_s26 }
 0x40f   : > { %2187 = vrot.lane.b32.xlu1 %v3208_v49, %s3381_s26 }
 0x461   : > { %v1845_v10 = vpop.permute.xlu1 %1844 }
 0x463   : > { %v1843_v9 = vpop.permute.xlu0 %1842 }
 0x464   : > { %3047 = vmatprep.mubr.msk.bf16.mxu1 %vm1354_vm3, %v1843_v9 }
 0x465   : > { %3048 = vmatmul.mubr.msk.bf16.vlgmr.msra.gmra.mxu1 %vm1354_vm3, %v1845_v10 }
 0x469   : > { %v1849_v12 = vpop.permute.xlu1 %1848 }
 0x46b   : > { %v1847_v11 = vpop.permute.xlu0 %1846 }
 0x46c   : > { %3051 = vmatprep.mubr.msk.bf16.mxu1 %vm1354_vm3, %v1847_v11 }
 0x46d   : > { %3052 = vmatmul.mubr.msk.bf16.gmra.mxu1 %vm1354_vm3, %v1849_v12 }
 0x471   : > { %v1853_v13 = vpop.permute.xlu1 %1852 }
 0x473   : > { %v1851_v0 = vpop.permute.xlu0 %1850 }
 0x474   : > { %3055 = vmatprep.mubr.msk.bf16.mxu1 %vm1354_vm3, %v1851_v0 }
 0x475   : > { %3056 = vmatmul.mubr.msk.bf16.gmra.mxu1 %vm1354_vm3, %v1853_v13 }
 0x479   : > { %v1857_v1 = vpop.permute.xlu1 %1856 }
 0x47b   : > { %v1855_v14 = vpop.permute.xlu0 %1854 }
 0x47c   : > { %3059 = vmatprep.mubr.msk.bf16.mxu1 %vm1354_vm3, %v1855_v14 }
 0x47d   : > { %3060 = vmatmul.mubr.msk.bf16.gmra.mxu1 %vm1354_vm3, %v1857_v1  ;;  %v3802_v52 = vpop.permute.xlu1 %2189 }
 0x47e   : > { %3063 = vmatprep.subr.bf16.mxu0 %v3802_v52 }
 0x481   : > { %v3852_v11 = vpop.permute.xlu1 %2187 }
 0x4b2   : > { %v3731_v16 = vpop.f32.mrf.mxu1 }
 0x4b3   : > { %v1495_v8 = vsel %vm1488_vm4, %v3731_v16, -inf }
 0x4b4   : > { %1496 = vmax.xlane.f32.xlu0 %v1495_v8  ;;  %v3735_v15 = vpop.f32.mrf.mxu1 }
 0x4b5   : > { %v1489_v18 = vsel %vm1488_vm4, %v3735_v15, -inf }
 0x4b6   : > { %v3737_v17 = vpop.f32.mrf.mxu1 }
 0x4b7   : > { %v1498_v22 = vsel %vm1488_vm4, %v3737_v17, -inf }
 0x4b8   : > { %1490 = vmax.xlane.f32.xlu0 %v1489_v18  ;;  %v3741_v19 = vpop.f32.mrf.mxu1 }
 0x4b9   : > { %v1492_v20 = vsel %vm1488_vm4, %v3741_v19, -inf }
 0x4ba   : > { %1493 = vmax.xlane.f32.xlu1 %v1492_v20  ;;  %v3745_v21 = vpop.f32.mrf.mxu1 }
 0x4bb   : > { %v1507_v24 = vsel %vm1488_vm4, %v3745_v21, -inf }
 0x4bc   : > { %1499 = vmax.xlane.f32.xlu0 %v1498_v22  ;;  %v3749_v23 = vpop.f32.mrf.mxu1 }
 0x4bd   : > { %v1501_v28 = vsel %vm1488_vm4, %v3749_v23, -inf }
 0x4be   : > { %1508 = vmax.xlane.f32.xlu1 %v1507_v24  ;;  %v3753_v25 = vpop.f32.mrf.mxu1 }
 0x4bf   : > { %v1510_v26 = vsel %vm1488_vm4, %v3753_v25, -inf }
 0x4c0   : > { %1511 = vmax.xlane.f32.xlu0 %v1510_v26  ;;  %v3757_v27 = vpop.f32.mrf.mxu1 }
 0x4c1   : > { %v1504_v30 = vsel %vm1488_vm4, %v3757_v27, -inf }
 0x4c2   : > { %1502 = vmax.xlane.f32.xlu1 %v1501_v28  ;;  %v3761_v29 = vpop.f32.mrf.mxu1 }
 0x4c3   : > { %v1519_v32 = vsel %vm1488_vm4, %v3761_v29, -inf }
 0x4c4   : > { %1505 = vmax.xlane.f32.xlu0 %v1504_v30  ;;  %v3765_v31 = vpop.f32.mrf.mxu1 }
 0x4c5   : > { %v1513_v36 = vsel %vm1488_vm4, %v3765_v31, -inf }
 0x4c6   : > { %1520 = vmax.xlane.f32.xlu1 %v1519_v32  ;;  %v3769_v33 = vpop.f32.mrf.mxu1 }
 0x4c7   : > { %v1522_v34 = vsel %vm1488_vm4, %v3769_v33, -inf }
 0x4c8   : > { %1523 = vmax.xlane.f32.xlu0 %v1522_v34  ;;  %v3773_v35 = vpop.f32.mrf.mxu1 }
 0x4c9   : > { %v1516_v38 = vsel %vm1488_vm4, %v3773_v35, -inf }
 0x4ca   : > { %1514 = vmax.xlane.f32.xlu1 %v1513_v36  ;;  %v3777_v37 = vpop.f32.mrf.mxu1 }
 0x4cb   : > { %v1531_v39 = vsel %vm1488_vm4, %v3777_v37, -inf }
 0x4cc   : > { %1517 = vmax.xlane.f32.xlu0 %v1516_v38  ;;  %v3783_v40 = vpop.f32.mrf.mxu1 }
 0x4cd   : > { %v1525_v45 = vsel %vm1488_vm4, %v3783_v40, -inf }
 0x4ce   : > { %1532 = vmax.xlane.f32.xlu1 %v1531_v39  ;;  %v3785_v41 = vpop.f32.mrf.mxu1 }
 0x4cf   : > { %v1534_v44 = vsel %vm1488_vm4, %v3785_v41, -inf }
 0x4d0   : > { %1535 = vmax.xlane.f32.xlu0 %v1534_v44  ;;  %v3791_v46 = vpop.f32.mrf.mxu1 }
 0x4d1   : > { %v1528_v47 = vsel %vm1488_vm4, %v3791_v46, -inf }
 0x4d2   : > { %1526 = vmax.xlane.f32.xlu1 %v1525_v45 }
 0x4d4   : > { %1529 = vmax.xlane.f32.xlu0 %v1528_v47 }
 0x525   : > { %v3806_v53 = vpop.f32.mrf.mxu1 }
 0x526   : > { %v2005_v54 = vsel %vm1488_vm4, %v3806_v53, -inf }
 0x527   : > { %2006 = vmax.xlane.f32.xlu1 %v2005_v54  ;;  %v3810_v56 = vpop.f32.mrf.mxu1 }
 0x528   : > { %v1999_v57 = vsel %vm1488_vm4, %v3810_v56, -inf }
 0x529   : > { %v3812_v43 = vpop.f32.mrf.mxu1 }
 0x52a   : > { %v2008_v58 = vsel %vm1488_vm4, %v3812_v43, -inf }
 0x52b   : > { %2000 = vmax.xlane.f32.xlu1 %v1999_v57  ;;  %v3818_v59 = vpop.f32.mrf.mxu1  ;;  %2009 = vmax.xlane.f32.xlu0 %v2008_v58 }
 0x52c   : > { %v2002_v62 = vsel %vm1488_vm4, %v3818_v59, -inf }
 0x52d   : > { %v3820_v60 = vpop.f32.mrf.mxu1 }
 0x52e   : > { %v2017_v61 = vsel %vm1488_vm4, %v3820_v60, -inf }
 0x52f   : > { %2018 = vmax.xlane.f32.xlu1 %v2017_v61  ;;  %v3826_v49 = vpop.f32.mrf.mxu1  ;;  %2003 = vmax.xlane.f32.xlu0 %v2002_v62 }
 0x530   : > { %v2011_v2 = vsel %vm1488_vm4, %v3826_v49, -inf }
 0x531   : > { %v3828_v63 = vpop.f32.mrf.mxu1 }
 0x532   : > { %v2020_v3 = vsel %vm1488_vm4, %v3828_v63, -inf }
 0x533   : > { %2012 = vmax.xlane.f32.xlu1 %v2011_v2  ;;  %v3834_v42 = vpop.f32.mrf.mxu1  ;;  %2021 = vmax.xlane.f32.xlu0 %v2020_v3 }
 0x534   : > { %v2014_v6 = vsel %vm1488_vm4, %v3834_v42, -inf }
 0x535   : > { %v3836_v4 = vpop.f32.mrf.mxu1 }
 0x536   : > { %v2029_v5 = vsel %vm1488_vm4, %v3836_v4, -inf }
 0x537   : > { %2030 = vmax.xlane.f32.xlu1 %v2029_v5  ;;  %v3842_v7 = vpop.f32.mrf.mxu1  ;;  %2015 = vmax.xlane.f32.xlu0 %v2014_v6 }
 0x538   : > { %v2023_v55 = vsel %vm1488_vm4, %v3842_v7, -inf }
 0x539   : > { %v3844_v48 = vpop.f32.mrf.mxu1 }
 0x53a   : > { %v2032_v9 = vsel %vm1488_vm4, %v3844_v48, -inf }
 0x53b   : > { %2024 = vmax.xlane.f32.xlu1 %v2023_v55  ;;  %v3850_v10 = vpop.f32.mrf.mxu1  ;;  %2033 = vmax.xlane.f32.xlu0 %v2032_v9 }
 0x53c   : > { %v2026_v14 = vsel %vm1488_vm4, %v3850_v10, -inf }
 0x53d   : > { %v1497_v12 = vpop.xlane.xlu0 %1496  ;;  %v3854_v0 = vpop.f32.mrf.mxu1 }
 0x53e   : > { %v1539_v13 = vsub.f32 %v3731_v16, %v1497_v12  ;;  %v2041_v1 = vsel %vm1488_vm4, %v3854_v0, -inf }
 0x53f   : > { %2042 = vmax.xlane.f32.xlu1 %v2041_v1  ;;  %v3861_v8 = vpop.f32.mrf.mxu1  ;;  %2027 = vmax.xlane.f32.xlu0 %v2026_v14 }
 0x540   : > { %v1557_v18 = vmul.f32 1.442695, %v1539_v13  ;;  %v2035_v20 = vsel %vm1488_vm4, %v3861_v8, -inf }
 0x541   : > { %v1491_v22 = vpop.xlane.xlu0 %1490  ;;  %v3865_v24 = vpop.f32.mrf.mxu1 }
 0x542   : > { %3213 = vpow2.f32 %v1557_v18  ;;  %v1537_v16 = vsub.f32 %v3735_v15, %v1491_v22  ;;  %v2044_v26 = vsel %vm1488_vm4, %v3865_v24, -inf }
 0x543   : > { %v1494_v28 = vpop.xlane.xlu1 %1493  ;;  %2036 = vmax.xlane.f32.xlu1 %v2035_v20  ;;  %2045 = vmax.xlane.f32.xlu0 %v2044_v26  ;;  %v3870_v30 = vpop.f32.mrf.mxu1 }
 0x544   : > { %v1553_v32 = vmul.f32 1.442695, %v1537_v16  ;;  %v1538_v34 = vsub.f32 %v3741_v19, %v1494_v28  ;;  %v2038_v36 = vsel %vm1488_vm4, %v3870_v30, -inf }
 0x545   : > { %v1500_v38 = vpop.xlane.xlu0 %1499 }
 0x546   : > { %3215 = vpow2.f32 %v1553_v32  ;;  %v1540_v39 = vsub.f32 %v3737_v17, %v1500_v38  ;;  %v1555_v44 = vmul.f32 1.442695, %v1538_v34 }
 0x547   : > { %v1509_v15 = vpop.xlane.xlu1 %1508  ;;  %2039 = vmax.xlane.f32.xlu0 %v2038_v36 }
 0x548   : > { %v1559_v45 = vmul.f32 1.442695, %v1540_v39  ;;  %v1543_v47 = vsub.f32 %v3745_v21, %v1509_v15 }
 0x549   : > { %v1512_v54 = vpop.xlane.xlu0 %1511 }
 0x54a   : > { %3217 = vpow2.f32 %v1559_v45  ;;  %v1565_v57 = vmul.f32 1.442695, %v1543_v47  ;;  %v1544_v58 = vsub.f32 %v3753_v25, %v1512_v54 }
 0x54b   : > { %3219 = vpow2.f32 %v1555_v44  ;;  %v1503_v19 = vpop.xlane.xlu1 %1502 }
 0x54c   : > { %3221 = vpow2.f32 %v1565_v57  ;;  %v1567_v61 = vmul.f32 1.442695, %v1544_v58  ;;  %v1541_v62 = vsub.f32 %v3749_v23, %v1503_v19 }
 0x54d   : > { %v1506_v2 = vpop.xlane.xlu0 %1505 }
 0x54e   : > { %v1561_v3 = vmul.f32 1.442695, %v1541_v62  ;;  %v1542_v17 = vsub.f32 %v3757_v27, %v1506_v2  ;;  %3223 = vpow2.f32 %v1567_v61 }
 0x54f   : > { %v3880_v5 = vpop.eup %3213  ;;  %v1521_v6 = vpop.xlane.xlu1 %1520 }
 0x550   : > { %3225 = vpow2.f32 %v1561_v3  ;;  %v1563_v21 = vmul.f32 1.442695, %v1542_v17  ;;  %v1547_v55 = vsub.f32 %v3761_v29, %v1521_v6  ;;  %v1591_v25 = vsel %vm1488_vm4, %v3880_v5, 0.0 }
 0x551   : > { %v1524_v9 = vpop.xlane.xlu0 %1523  ;;  %1592 = vadd.xlane.f32.xlu1 %v1591_v25 }
 0x552   : > { %v1573_v12 = vmul.f32 1.442695, %v1547_v55  ;;  %v1548_v23 = vsub.f32 %v3769_v33, %v1524_v9  ;;  %3227 = vpow2.f32 %v1563_v21 }
 0x553   : > { %v3886_v13 = vpop.eup %3215  ;;  %v1515_v27 = vpop.xlane.xlu1 %1514 }
 0x554   : > { %3229 = vpow2.f32 %v1573_v12  ;;  %v1575_v1 = vmul.f32 1.442695, %v1548_v23  ;;  %v1545_v14 = vsub.f32 %v3765_v31, %v1515_v27  ;;  %v1585_v18 = vsel %vm1488_vm4, %v3886_v13, 0.0 }
 0x555   : > { %v1518_v29 = vpop.xlane.xlu0 %1517  ;;  %1586 = vadd.xlane.f32.xlu1 %v1585_v18 }
 0x556   : > { %v1569_v20 = vmul.f32 1.442695, %v1545_v14  ;;  %v1546_v22 = vsub.f32 %v3773_v35, %v1518_v29  ;;  %3231 = vpow2.f32 %v1575_v1 }
 0x557   : > { %v3892_v16 = vpop.eup %3217  ;;  %v1533_v33 = vpop.xlane.xlu1 %1532 }
 0x558   : > { %v3894_v26 = vpop.eup %3219  ;;  %3233 = vpow2.f32 %v1569_v20  ;;  %v1571_v28 = vmul.f32 1.442695, %v1546_v22  ;;  %v1551_v32 = vsub.f32 %v3777_v37, %v1533_v33  ;;  %v1594_v31 = vsel %vm1488_vm4, %v3892_v16, 0.0 }
 0x559   : > { %v3899_v34 = vpop.eup %3221  ;;  %v1536_v36 = vpop.xlane.xlu0 %1535  ;;  %1595 = vadd.xlane.f32.xlu0 %v1594_v31  ;;  %v1588_v47 = vsel %vm1488_vm4, %v3894_v26, 0.0 }
 0x55a   : > { %v1581_v38 = vmul.f32 1.442695, %v1551_v32  ;;  %v1552_v35 = vsub.f32 %v3785_v41, %v1536_v36  ;;  %v1603_v39 = vsel %vm1488_vm4, %v3899_v34, 0.0  ;;  %3235 = vpow2.f32 %v1571_v28 }
 0x55b   : > { %v1527_v44 = vpop.xlane.xlu1 %1526  ;;  %1604 = vadd.xlane.f32.xlu1 %v1603_v39  ;;  %v3904_v15 = vpop.eup %3223 }
 0x55c   : > { %3237 = vpow2.f32 %v1581_v38  ;;  %v1583_v37 = vmul.f32 1.442695, %v1552_v35  ;;  %v1549_v45 = vsub.f32 %v3783_v40, %v1527_v44  ;;  %v1606_v40 = vsel %vm1488_vm4, %v3904_v15, 0.0 }
 0x55d   : > { %v3909_v54 = vpop.eup %3225  ;;  %1589 = vadd.xlane.f32.xlu0 %v1588_v47  ;;  %v1530_v57 = vpop.xlane.xlu0 %1529 }
 0x55e   : > { %v1577_v41 = vmul.f32 1.442695, %v1549_v45  ;;  %v1550_v58 = vsub.f32 %v3791_v46, %v1530_v57  ;;  %v1597_v19 = vsel %vm1488_vm4, %v3909_v54, 0.0  ;;  %3239 = vpow2.f32 %v1583_v37 }
 0x55f   : > { %1598 = vadd.xlane.f32.xlu1 %v1597_v19  ;;  %v3914_v61 = vpop.eup %3227 }
 0x560   : > { %3241 = vpow2.f32 %v1577_v41  ;;  %v1579_v62 = vmul.f32 1.442695, %v1550_v58  ;;  %v1600_v17 = vsel %vm1488_vm4, %v3914_v61, 0.0 }
 0x561   : > { %v3918_v2 = vpop.eup %3229  ;;  %1607 = vadd.xlane.f32.xlu0 %v1606_v40 }
 0x562   : > { %v1615_v3 = vsel %vm1488_vm4, %v3918_v2, 0.0  ;;  %3243 = vpow2.f32 %v1579_v62 }
 0x563   : > { %1616 = vadd.xlane.f32.xlu1 %v1615_v3  ;;  %v3922_v46 = vpop.eup %3231 }
 0x564   : > { %v1618_v25 = vsel %vm1488_vm4, %v3922_v46, 0.0 }
 0x565   : > { %v3926_v6 = vpop.eup %3233  ;;  %1601 = vadd.xlane.f32.xlu0 %v1600_v17 }
 0x566   : > { %v1609_v21 = vsel %vm1488_vm4, %v3926_v6, 0.0 }
 0x567   : > { %1610 = vadd.xlane.f32.xlu1 %v1609_v21  ;;  %v3930_v55 = vpop.eup %3235 }
 0x568   : > { %v1612_v27 = vsel %vm1488_vm4, %v3930_v55, 0.0 }
 0x569   : > { %v3934_v9 = vpop.eup %3237  ;;  %1619 = vadd.xlane.f32.xlu0 %v1618_v25 }
 0x56a   : > { %v1627_v12 = vsel %vm1488_vm4, %v3934_v9, 0.0 }
 0x56b   : > { %1628 = vadd.xlane.f32.xlu1 %v1627_v12  ;;  %v3938_v23 = vpop.eup %3239 }
 0x56c   : > { %v1630_v18 = vsel %vm1488_vm4, %v3938_v23, 0.0 }
 0x56d   : > { %v3942_v1 = vpop.eup %3241  ;;  %1613 = vadd.xlane.f32.xlu0 %v1612_v27 }
 0x56e   : > { %v1621_v14 = vsel %vm1488_vm4, %v3942_v1, 0.0 }
 0x56f   : > { %1622 = vadd.xlane.f32.xlu1 %v1621_v14  ;;  %v3948_v29 = vpop.eup %3243 }
 0x570   : > { %v1624_v20 = vsel %vm1488_vm4, %v3948_v29, 0.0 }
 0x571   : > { %1631 = vadd.xlane.f32.xlu0 %v1630_v18 }
 0x575   : > { %1625 = vadd.xlane.f32.xlu0 %v1624_v20 }
 0x5b0   : > { %v2007_v22 = vpop.xlane.xlu1 %2006 }
 0x5b1   : > { %v2049_v33 = vsub.f32 %v3806_v53, %v2007_v22 }
 0x5b3   : > { %v2067_v28 = vmul.f32 1.442695, %v2049_v33 }
 0x5b4   : > { %v2001_v32 = vpop.xlane.xlu1 %2000  ;;  %v2010_v31 = vpop.xlane.xlu0 %2009 }
 0x5b5   : > { %3245 = vpow2.f32 %v2067_v28  ;;  %v2047_v36 = vsub.f32 %v3810_v56, %v2001_v32  ;;  %v2050_v38 = vsub.f32 %v3812_v43, %v2010_v31 }
 0x5b7   : > { %v2063_v35 = vmul.f32 1.442695, %v2047_v36  ;;  %v2069_v39 = vmul.f32 1.442695, %v2050_v38 }
 0x5b8   : > { %v2019_v44 = vpop.xlane.xlu1 %2018  ;;  %v2004_v37 = vpop.xlane.xlu0 %2003 }
 0x5b9   : > { %3247 = vpow2.f32 %v2063_v35  ;;  %v2053_v45 = vsub.f32 %v3820_v60, %v2019_v44  ;;  %v2048_v47 = vsub.f32 %v3818_v59, %v2004_v37 }
 0x5ba   : > { %3249 = vpow2.f32 %v2069_v39 }
 0x5bb   : > { %v2075_v57 = vmul.f32 1.442695, %v2053_v45  ;;  %v2065_v53 = vmul.f32 1.442695, %v2048_v47 }
 0x5bc   : > { %v2013_v41 = vpop.xlane.xlu1 %2012  ;;  %v2022_v58 = vpop.xlane.xlu0 %2021 }
 0x5bd   : > { %3251 = vpow2.f32 %v2075_v57  ;;  %v2051_v19 = vsub.f32 %v3826_v49, %v2013_v41  ;;  %v2054_v56 = vsub.f32 %v3828_v63, %v2022_v58 }
 0x5be   : > { %3253 = vpow2.f32 %v2065_v53 }
 0x5bf   : > { %v2071_v43 = vmul.f32 1.442695, %v2051_v19  ;;  %v2077_v62 = vmul.f32 1.442695, %v2054_v56 }
 0x5c0   : > { %v2031_v40 = vpop.xlane.xlu1 %2030  ;;  %v2016_v3 = vpop.xlane.xlu0 %2015 }
 0x5c1   : > { %3255 = vpow2.f32 %v2071_v43  ;;  %v2057_v60 = vsub.f32 %v3836_v4, %v2031_v40  ;;  %v2052_v59 = vsub.f32 %v3834_v42, %v2016_v3 }
 0x5c2   : > { %v3961_v17 = vpop.eup %3245  ;;  %3257 = vpow2.f32 %v2077_v62 }
 0x5c3   : > { %v2073_v21 = vmul.f32 1.442695, %v2052_v59  ;;  %v2101_v25 = vsel %vm1488_vm4, %v3961_v17, 0.0  ;;  %v2083_v49 = vmul.f32 1.442695, %v2057_v60 }
 0x5c4   : > { %v2025_v12 = vpop.xlane.xlu1 %2024  ;;  %2102 = vadd.xlane.f32.xlu1 %v2101_v25  ;;  %v2034_v63 = vpop.xlane.xlu0 %2033 }
 0x5c5   : > { %v2055_v27 = vsub.f32 %v3842_v7, %v2025_v12  ;;  %3259 = vpow2.f32 %v2073_v21  ;;  %v2058_v20 = vsub.f32 %v3844_v48, %v2034_v63 }
 0x5c6   : > { %v3966_v14 = vpop.eup %3247  ;;  %3261 = vpow2.f32 %v2083_v49 }
 0x5c7   : > { %v3968_v18 = vpop.eup %3249  ;;  %v2095_v42 = vsel %vm1488_vm4, %v3966_v14, 0.0  ;;  %v2079_v4 = vmul.f32 1.442695, %v2055_v27  ;;  %v2085_v38 = vmul.f32 1.442695, %v2058_v20 }
 0x5c8   : > { %v2043_v22 = vpop.xlane.xlu1 %2042  ;;  %2096 = vadd.xlane.f32.xlu1 %v2095_v42  ;;  %v2104_v33 = vsel %vm1488_vm4, %v3968_v18, 0.0  ;;  %v2028_v28 = vpop.xlane.xlu0 %2027 }
 0x5c9   : > { %2105 = vadd.xlane.f32.xlu0 %v2104_v33  ;;  %v2061_v31 = vsub.f32 %v3854_v0, %v2043_v22  ;;  %3263 = vpow2.f32 %v2079_v4  ;;  %v2056_v48 = vsub.f32 %v3850_v10, %v2028_v28 }
 0x5ca   : > { %v3975_v7 = vpop.eup %3251  ;;  %3265 = vpow2.f32 %v2085_v38 }
 0x5cb   : > { %v3977_v32 = vpop.eup %3253  ;;  %v2113_v36 = vsel %vm1488_vm4, %v3975_v7, 0.0  ;;  %v2091_v0 = vmul.f32 1.442695, %v2061_v31  ;;  %v2081_v41 = vmul.f32 1.442695, %v2056_v48 }
 0x5cc   : > { %2114 = vadd.xlane.f32.xlu1 %v2113_v36  ;;  %v2037_v35 = vpop.xlane.xlu1 %2036  ;;  %v2098_v39 = vsel %vm1488_vm4, %v3977_v32, 0.0  ;;  %v2046_v44 = vpop.xlane.xlu0 %2045 }
 0x5cd   : > { %v2059_v37 = vsub.f32 %v3861_v8, %v2037_v35  ;;  %2099 = vadd.xlane.f32.xlu0 %v2098_v39  ;;  %v2062_v53 = vsub.f32 %v3865_v24, %v2046_v44 }
 0x5ce   : > { %v3986_v45 = vpop.eup %3255 }
 0x5cf   : > { %v3988_v47 = vpop.eup %3257  ;;  %v2087_v57 = vmul.f32 1.442695, %v2059_v37  ;;  %v2107_v10 = vsel %vm1488_vm4, %v3986_v45, 0.0  ;;  %v2093_v19 = vmul.f32 1.442695, %v2062_v53 }
 0x5d0   : > { %2108 = vadd.xlane.f32.xlu1 %v2107_v10  ;;  %v2116_v58 = vsel %vm1488_vm4, %v3988_v47, 0.0  ;;  %v4011_v21 = vpop.xlane.xlu0 %2039 }
 0x5d1   : > { %3267 = vpow2.f32 %v2087_v57  ;;  %2117 = vadd.xlane.f32.xlu0 %v2116_v58 }
 0x5d2   : > { %v3995_v8 = vpop.eup %3259  ;;  %3269 = vpow2.f32 %v2091_v0 }
 0x5d3   : > { %3271 = vpow2.f32 %v2081_v41  ;;  %v2110_v56 = vsel %vm1488_vm4, %v3995_v8, 0.0  ;;  %v3999_v24 = vpop.eup %3261 }
 0x5d4   : > { %3273 = vpow2.f32 %v2093_v19  ;;  %v2125_v43 = vsel %vm1488_vm4, %v3999_v24, 0.0 }
 0x5d5   : > { %2111 = vadd.xlane.f32.xlu0 %v2110_v56 }
 0x5d6   : > { %v4003_v62 = vpop.eup %3263 }
 0x5d7   : > { %v2119_v3 = vsel %vm1488_vm4, %v4003_v62, 0.0  ;;  %v4007_v60 = vpop.eup %3265 }
 0x5d8   : > { %v2128_v63 = vsel %vm1488_vm4, %v4007_v60, 0.0 }
 0x5d9   : > { %2126 = vadd.xlane.f32.xlu0 %v2125_v43 }
 0x5da   : > { %v1593_v40 = vpop.xlane.xlu1 %1592 }
 0x5dd   : > { %2120 = vadd.xlane.f32.xlu0 %v2119_v3 }
 0x5de   : > { %v4009_v59 = vpop.eup %3267  ;;  %v1587_v12 = vpop.xlane.xlu1 %1586 }
 0x5df   : > { %v2131_v25 = vsel %vm1488_vm4, %v4009_v59, 0.0  ;;  %v4015_v49 = vpop.eup %3269 }
 0x5e0   : > { %2132 = vadd.xlane.f32.xlu1 %v2131_v25  ;;  %v4019_v27 = vpop.eup %3271  ;;  %v2137_v4 = vsel %vm1488_vm4, %v4015_v49, 0.0 }
 0x5e1   : > { %2129 = vadd.xlane.f32.xlu0 %v2128_v63  ;;  %v4023_v20 = vpop.eup %3273  ;;  %v2122_v33 = vsel %vm1488_vm4, %v4019_v27, 0.0 }
 0x5e2   : > { %v1596_v42 = vpop.xlane.xlu0 %1595  ;;  %v2140_v31 = vsel %vm1488_vm4, %v4023_v20, 0.0 }
 0x5e3   : > { %3275 = vrcp.f32 %v1596_v42 }
 0x5e4   : > { %2138 = vadd.xlane.f32.xlu1 %v2137_v4  ;;  %v1605_v22 = vpop.xlane.xlu1 %1604  ;;  %3277 = vrcp.f32 %v1587_v12 }
 0x5e5   : > { %2123 = vadd.xlane.f32.xlu0 %v2122_v33  ;;  %3279 = vrcp.f32 %v1593_v40 }
 0x5e6   : > { %v1590_v28 = vpop.xlane.xlu0 %1589 }
 0x5e7   : > { %3281 = vrcp.f32 %v1590_v28  ;;  %v2060_v28 = vsub.f32 %v3870_v30, %v4011_v21 }
 0x5e8   : > { %v1599_v36 = vpop.xlane.xlu1 %1598  ;;  %2141 = vadd.xlane.f32.xlu1 %v2140_v31 }
 0x5ea   : > { %v1608_v38 = vpop.xlane.xlu0 %1607 }
 0x5eb   : > { %3283 = vrcp.f32 %v1608_v38 }
 0x5ec   : > { %v1617_v48 = vpop.xlane.xlu1 %1616  ;;  %3285 = vrcp.f32 %v1599_v36  ;;  %v2089_v36 = vmul.f32 1.442695, %v2060_v28 }
 0x5ed   : > { %3287 = vrcp.f32 %v1605_v22 }
 0x5ee   : > { %v1602_v35 = vpop.xlane.xlu0 %1601 }
 0x5ef   : > { %3289 = vrcp.f32 %v1602_v35 }
 0x5f0   : > { %v1611_v39 = vpop.xlane.xlu1 %1610  ;;  %v3276_v44 = vpop.eup %3275 }
 0x5f1   : > { %v3278_v37 = vpop.eup %3277  ;;  %v1652_v10 = vmul.f32 %v3276_v44, %v3892_v16 }
 0x5f2   : > { %v1620_v0 = vpop.xlane.xlu0 %1619  ;;  %v3280_v57 = vpop.eup %3279  ;;  %v1649_v58 = vmul.f32 %v3278_v37, %v3886_v13 }
 0x5f3   : > { %3291 = vrcp.f32 %v1620_v0  ;;  %v1651_v56 = vmul.f32 %v3280_v57, %v3880_v5 }
 0x5f4   : > { %v3282_v53 = vpop.eup %3281  ;;  %v1629_v41 = vpop.xlane.xlu1 %1628  ;;  %3293 = vrcp.f32 %v1611_v39 }
 0x5f5   : > { %v1650_v19 = vmul.f32 %v3282_v53, %v3894_v26  ;;  %3295 = vrcp.f32 %v1617_v48  ;;  %v1666_v3 = vpack.c.bf16 %v1652_v10, %v1651_v56 }
 0x5f6   : > { %v1614_v43 = vpop.xlane.xlu0 %1613 }
 0x5f7   : > { %3297 = vrcp.f32 %v1614_v43  ;;  %v1665_v40 = vpack.c.bf16 %v1650_v19, %v1649_v58 }
 0x5f8   : > { %v3284_v25 = vpop.eup %3283  ;;  %v1623_v12 = vpop.xlane.xlu1 %1622 }
 0x5f9   : > { %3023 = vmatprep.mubr.msk.bf16.mxu0 %vm1488_vm4, %v1665_v40  ;;  %2183 = vrot.lane.b32.xlu1 %v3799_v51, %s3381_s26  ;;  %v3286_v16 = vpop.eup %3285  ;;  %v1656_v26 = vmul.f32 %v3284_v25, %v3904_v15 }
 0x5fa   : > { %3024 = vmatmul.mubr.msk.bf16.vlgmr.msra.gmra.mxu0 %vm1488_vm4, %v1666_v3  ;;  %v1632_v13 = vpop.xlane.xlu0 %1631  ;;  %v3288_v63 = vpop.eup %3287  ;;  %v1653_v51 = vmul.f32 %v3286_v16, %v3909_v54 }
 0x5fb   : > { %2185 = vrot.lane.b32.xlu0 %v3795_v50, %s3381_s26  ;;  %3064 = vmatpush3.bf16.msra.mxu0 %v3802_v52  ;;  %3299 = vrcp.f32 %v1632_v13  ;;  %v1655_v22 = vmul.f32 %v3288_v63, %v3899_v34 }
 0x5fc   : > { %v3290_v5 = vpop.eup %3289  ;;  %3065 = vmatprep.subr.bf16.mxu0 %v3852_v11  ;;  %3301 = vrcp.f32 %v1623_v12 }
 0x5fd   : > { %v1654_v42 = vmul.f32 %v3290_v5, %v3914_v61  ;;  %3303 = vrcp.f32 %v1629_v41  ;;  %v1668_v52 = vpack.c.bf16 %v1656_v26, %v1655_v22 }
 0x5fe   : > { %v1626_v4 = vpop.xlane.xlu0 %1625 }
 0x5ff   : > { %3066 = vmatpush3.bf16.msra.mxu0 %v3852_v11  ;;  %3305 = vrcp.f32 %v1626_v4  ;;  %v1667_v50 = vpack.c.bf16 %v1654_v42, %v1653_v51 }
 0x600   : > { %v3292_v33 = vpop.eup %3291  ;;  %3307 = vpow2.f32 %v2089_v36 }
 0x601   : > { %3027 = vmatprep.mubr.msk.bf16.mxu0 %vm1488_vm4, %v1667_v50  ;;  %v3294_v15 = vpop.eup %3293  ;;  %v1660_v31 = vmul.f32 %v3292_v33, %v3922_v46 }
 0x602   : > { %3028 = vmatmul.mubr.msk.bf16.gmra.mxu0 %vm1488_vm4, %v1668_v52  ;;  %v3296_v54 = vpop.eup %3295  ;;  %v1657_v34 = vmul.f32 %v3294_v15, %v3926_v6 }
 0x603   : > { %v1659_v38 = vmul.f32 %v3296_v54, %v3918_v2 }
 0x604   : > { %v3298_v61 = vpop.eup %3297 }
 0x605   : > { %v1658_v11 = vmul.f32 %v3298_v61, %v3930_v55  ;;  %v1670_v35 = vpack.c.bf16 %v1660_v31, %v1659_v38 }
 0x607   : > { %v1669_v48 = vpack.c.bf16 %v1658_v11, %v1657_v34 }
 0x608   : > { %v3300_v39 = vpop.eup %3299 }
 0x609   : > { %3031 = vmatprep.mubr.msk.bf16.mxu0 %vm1488_vm4, %v1669_v48  ;;  %v3302_v30 = vpop.eup %3301  ;;  %v1664_v46 = vmul.f32 %v3300_v39, %v3938_v23 }
 0x60a   : > { %3032 = vmatmul.mubr.msk.bf16.gmra.mxu0 %vm1488_vm4, %v1670_v35  ;;  %v3304_v21 = vpop.eup %3303  ;;  %v1661_v37 = vmul.f32 %v3302_v30, %v3942_v1 }
 0x60b   : > { %v1663_v55 = vmul.f32 %v3304_v21, %v3934_v9 }
 0x60c   : > { %v3306_v44 = vpop.eup %3305 }
 0x60d   : > { %v1662_v6 = vmul.f32 %v3306_v44, %v3948_v29  ;;  %v1672_v0 = vpack.c.bf16 %v1664_v46, %v1663_v55  ;;  %v4062_v57 = vpop.eup %3307 }
 0x60e   : > { %v2134_v53 = vsel %vm1488_vm4, %v4062_v57, 0.0 }
 0x60f   : > { %v1671_v2 = vpack.c.bf16 %v1662_v6, %v1661_v37 }
 0x611   : > { %3035 = vmatprep.mubr.msk.bf16.mxu0 %vm1488_vm4, %v1671_v2 }
 0x612   : > { %3036 = vmatmul.mubr.msk.bf16.gmra.mxu0 %vm1488_vm4, %v1672_v0 }
 0x61a   : > { %2135 = vadd.xlane.f32.xlu0 %v2134_v53 }
 0x64d   : > { %v2103_v10 = vpop.xlane.xlu1 %2102 }
 0x651   : > { %v2097_v23 = vpop.xlane.xlu1 %2096 }
 0x652   : > { %v2106_v41 = vpop.xlane.xlu0 %2105  ;;  %3309 = vrcp.f32 %v2097_v23 }
 0x655   : > { %v2115_v58 = vpop.xlane.xlu1 %2114 }
 0x656   : > { %v2100_v1 = vpop.xlane.xlu0 %2099 }
 0x657   : > { %3311 = vrcp.f32 %v2100_v1 }
 0x658   : > { %3313 = vrcp.f32 %v2106_v41 }
 0x659   : > { %v2109_v40 = vpop.xlane.xlu1 %2108 }
 0x65a   : > { %v2118_v29 = vpop.xlane.xlu0 %2117 }
 0x65e   : > { %v2112_v9 = vpop.xlane.xlu0 %2111 }
 0x65f   : > { %v3310_v19 = vpop.eup %3309  ;;  %3315 = vrcp.f32 %v2112_v9 }
 0x660   : > { %v2159_v3 = vmul.f32 %v3310_v19, %v3966_v14  ;;  %3317 = vrcp.f32 %v2103_v10 }
 0x661   : > { %3319 = vrcp.f32 %v2109_v40 }
 0x662   : > { %v2127_v56 = vpop.xlane.xlu0 %2126  ;;  %3321 = vrcp.f32 %v2118_v29 }
 0x663   : > { %3323 = vrcp.f32 %v2115_v58 }
 0x664   : > { %v3312_v43 = vpop.eup %3311 }
 0x665   : > { %v2160_v25 = vmul.f32 %v3312_v43, %v3977_v32  ;;  %v3314_v42 = vpop.eup %3313 }
 0x666   : > { %v2121_v16 = vpop.xlane.xlu0 %2120  ;;  %v2162_v50 = vmul.f32 %v3314_v42, %v3968_v18 }
 0x667   : > { %v2175_v12 = vpack.c.bf16 %v2160_v25, %v2159_v3 }
 0x669   : > { %3071 = vmatprep.mubr.msk.bf16.mxu0 %vm1488_vm4, %v2175_v12  ;;  %v2133_v13 = vpop.xlane.xlu1 %2132  ;;  %v3211_v12 = vld [vmem:[%s4214_s12 + $0x8] sm:$0xff]  }
 0x66a   : > { %v2130_v63 = vpop.xlane.xlu0 %2129  ;;  %3107 = vmatprep.subr.bf16.mxu1 %v3211_v12 }
 0x66b   : > { %3109 = vmatpush3.bf16.msra.mxu1 %v3211_v12 }
 0x66c   : > { %v3316_v4 = vpop.eup %3315 }
 0x66d   : > { %v2139_v5 = vpop.xlane.xlu1 %2138  ;;  %v3318_v32 = vpop.eup %3317  ;;  %v2164_v33 = vmul.f32 %v3316_v4, %v3995_v8 }
 0x66e   : > { %v2124_v26 = vpop.xlane.xlu0 %2123  ;;  %v3320_v22 = vpop.eup %3319  ;;  %v2161_v28 = vmul.f32 %v3318_v32, %v3961_v17 }
 0x66f   : > { %3325 = vrcp.f32 %v2124_v26  ;;  %v2163_v15 = vmul.f32 %v3320_v22, %v3986_v45  ;;  %v3322_v61 = vpop.eup %3321 }
 0x670   : > { %3327 = vrcp.f32 %v2121_v16  ;;  %v2176_v54 = vpack.c.bf16 %v2162_v50, %v2161_v28  ;;  %v3324_v36 = vpop.eup %3323  ;;  %v2166_v11 = vmul.f32 %v3322_v61, %v3988_v47 }
 0x671   : > { %v2142_v51 = vpop.xlane.xlu1 %2141  ;;  %3329 = vrcp.f32 %v2130_v63  ;;  %v2177_v31 = vpack.c.bf16 %v2164_v33, %v2163_v15  ;;  %v2165_v17 = vmul.f32 %v3324_v36, %v3975_v7 }
 0x672   : > { %v2186_v14 = vpop.permute.xlu0 %2185  ;;  %3331 = vrcp.f32 %v2127_v56 }
 0x673   : > { %3067 = vmatprep.subr.bf16.mxu0 %v2186_v14  ;;  %v2178_v48 = vpack.c.bf16 %v2166_v11, %v2165_v17  ;;  %3333 = vrcp.f32 %v2142_v51 }
 0x674   : > { %3068 = vmatpush3.bf16.msra.mxu0 %v2186_v14  ;;  %3335 = vrcp.f32 %v2133_v13 }
 0x675   : > { %v2184_v52 = vpop.permute.xlu1 %2183  ;;  %3337 = vrcp.f32 %v2139_v5  ;;  %v3212_v5 = vld [vmem:[%s4214_s12] sm:$0xff]  }
 0x676   : > { %3069 = vmatprep.subr.bf16.mxu0 %v2184_v52  ;;  %3108 = vmatprep.subr.bf16.mxu1 %v3212_v5 }
 0x677   : > { %3110 = vmatpush3.bf16.msra.mxu1 %v3212_v5 }
 0x678   : > { %3070 = vmatpush3.bf16.msra.mxu0 %v2184_v52 }
 0x679   : > { %3087 = vmatprep.subr.bf16.mxu0 %v3211_v12 }
 0x67b   : > { %3072 = vmatmul.mubr.msk.bf16.vlgmr.msra.gmra.mxu0 %vm1488_vm4, %v2176_v54 }
 0x67c   : > { %v3326_v34 = vpop.eup %3325  ;;  %3075 = vmatprep.mubr.msk.bf16.mxu0 %vm1488_vm4, %v2177_v31  ;;  %3088 = vmatpush3.bf16.msra.mxu0 %v3211_v12 }
 0x67d   : > { %v3328_v18 = vpop.eup %3327  ;;  %v2168_v8 = vmul.f32 %v3326_v34, %v4019_v27  ;;  %3089 = vmatprep.subr.bf16.mxu0 %v3212_v5 }
 0x67e   : > { %v2167_v38 = vmul.f32 %v3328_v18, %v4003_v62  ;;  %v3330_v45 = vpop.eup %3329 }
 0x67f   : > { %v3332_v39 = vpop.eup %3331  ;;  %v2170_v30 = vmul.f32 %v3330_v45, %v4007_v60 }
 0x680   : > { %v2179_v35 = vpack.c.bf16 %v2168_v8, %v2167_v38  ;;  %v2169_v21 = vmul.f32 %v3332_v39, %v3999_v24  ;;  %v3334_v47 = vpop.eup %3333  ;;  %3090 = vmatpush3.bf16.msra.mxu0 %v3212_v5 }
 0x681   : > { %v3336_v62 = vpop.eup %3335  ;;  %v2174_v37 = vmul.f32 %v3334_v47, %v4023_v20 }
 0x682   : > { %v2180_v44 = vpack.c.bf16 %v2170_v30, %v2169_v21  ;;  %v3338_v27 = vpop.eup %3337  ;;  %v2171_v6 = vmul.f32 %v3336_v62, %v4009_v59 }
 0x683   : > { %3076 = vmatmul.mubr.msk.bf16.gmra.mxu0 %vm1488_vm4, %v2178_v48  ;;  %v2173_v24 = vmul.f32 %v3338_v27, %v4015_v49 }
 0x684   : > { %3079 = vmatprep.mubr.msk.bf16.mxu0 %vm1488_vm4, %v2179_v35 }
 0x685   : > { %v2182_v2 = vpack.c.bf16 %v2174_v37, %v2173_v24 }
 0x68b   : > { %3080 = vmatmul.mubr.msk.bf16.gmra.mxu0 %vm1488_vm4, %v2180_v44 }
 0x6a3   : > { %v2136_v7 = vpop.xlane.xlu0 %2135 }
 0x6a4   : > { %3339 = vrcp.f32 %v2136_v7 }
 0x6b1   : > { %v3340_v46 = vpop.eup %3339 }
 0x6b2   : > { %v2172_v60 = vmul.f32 %v3340_v46, %v4062_v57 }
 0x6b4   : > { %v2181_v55 = vpack.c.bf16 %v2172_v60, %v2171_v6 }
 0x6b6   : > { %3083 = vmatprep.mubr.msk.bf16.mxu0 %vm1488_vm4, %v2181_v55 }
 0x6b7   : > { %3084 = vmatmul.mubr.msk.bf16.gmra.mxu0 %vm1488_vm4, %v2182_v2 }
 0x6ba   : > { %v3025_v0 = vpop.f32.mrf.mxu0 }
 0x6bb   : > { %1820 = vst.msk [vmem:[#allocation4 + $0x10] sm:$0xff] %vm1354_vm3, %v3025_v0 }
 0x6bc   : > { %v1755_v53 = vpop.f32.mrf.mxu0 }
 0x6bd   : > { %1818 = vst.msk [vmem:[#allocation4] sm:$0xff] %vm1354_vm3, %v1755_v53 }
 0x6be   : > { %v3026_v10 = vpop.f32.mrf.mxu0 }
 0x6bf   : > { %1821 = vst.msk [vmem:[#allocation4 + $0x18] sm:$0xff] %vm1354_vm3, %v3026_v10 }
 0x6c0   : > { %v1758_v59 = vpop.f32.mrf.mxu0 }
 0x6c1   : > { %1819 = vst.msk [vmem:[#allocation4 + $0x8] sm:$0xff] %vm1354_vm3, %v1758_v59 }
 0x6c2   : > { %v3029_v20 = vpop.f32.mrf.mxu0 }
 0x6c3   : > { %1824 = vst.msk [vmem:[#allocation4 + $0x30] sm:$0xff] %vm1354_vm3, %v3029_v20 }
 0x6c4   : > { %v1771_v49 = vpop.f32.mrf.mxu0 }
 0x6c5   : > { %1822 = vst.msk [vmem:[#allocation4 + $0x20] sm:$0xff] %vm1354_vm3, %v1771_v49 }
 0x6c6   : > { %v3030_v57 = vpop.f32.mrf.mxu0 }
 0x6c7   : > { %1825 = vst.msk [vmem:[#allocation4 + $0x38] sm:$0xff] %vm1354_vm3, %v3030_v57 }
 0x6c8   : > { %v1774_v23 = vpop.f32.mrf.mxu0 }
 0x6c9   : > { %1823 = vst.msk [vmem:[#allocation4 + $0x28] sm:$0xff] %vm1354_vm3, %v1774_v23 }
 0x6ca   : > { %v3033_v41 = vpop.f32.mrf.mxu0 }
 0x6cb   : > { %1828 = vst.msk [vmem:[#allocation4 + $0x50] sm:$0xff] %vm1354_vm3, %v3033_v41 }
 0x6cc   : > { %v1787_v1 = vpop.f32.mrf.mxu0 }
 0x6cd   : > { %1826 = vst.msk [vmem:[#allocation4 + $0x40] sm:$0xff] %vm1354_vm3, %v1787_v1 }
 0x6ce   : > { %v3034_v29 = vpop.f32.mrf.mxu0 }
 0x6cf   : > { %1829 = vst.msk [vmem:[#allocation4 + $0x58] sm:$0xff] %vm1354_vm3, %v3034_v29  ;;  %v2801_v29 = vld [vmem:[%s4215_s13] ss:$0 sm:$0xff] }
 0x6d0   : > { %v1790_v9 = vpop.f32.mrf.mxu0 }
 0x6d1   : > { %1827 = vst.msk [vmem:[#allocation4 + $0x48] sm:$0xff] %vm1354_vm3, %v1790_v9 }
 0x6d2   : > { %v3037_v58 = vpop.f32.mrf.mxu0 }
 0x6d3   : > { %1832 = vst.msk [vmem:[#allocation4 + $0x70] sm:$0xff] %vm1354_vm3, %v3037_v58 }
 0x6d4   : > { %v1803_v19 = vpop.f32.mrf.mxu0 }
 0x6d5   : > { %1830 = vst.msk [vmem:[#allocation4 + $0x60] sm:$0xff] %vm1354_vm3, %v1803_v19 }
 0x6d6   : > { %v3038_v56 = vpop.f32.mrf.mxu0 }
 0x6d7   : > { %1833 = vst.msk [vmem:[#allocation4 + $0x78] sm:$0xff] %vm1354_vm3, %v3038_v56 }
 0x6d8   : > { %v1806_v43 = vpop.f32.mrf.mxu0 }
 0x6d9   : > { %1831 = vst.msk [vmem:[#allocation4 + $0x68] sm:$0xff] %vm1354_vm3, %v1806_v43 }
 0x73b   : > { %v3073_v40 = vpop.f32.mrf.mxu0 }
 0x73d   : > { %v2253_v3 = vpop.f32.mrf.mxu0 }
 0x73e   : > { %2332 = vrot.lane.b32.xlu0 %v2253_v3, %s3382_s16 }
 0x73f   : > { %v3074_v25 = vpop.f32.mrf.mxu0 }
 0x741   : > { %v2256_v16 = vpop.f32.mrf.mxu0 }
 0x742   : > { %2334 = vrot.lane.b32.xlu1 %v2256_v16, %s3382_s16 }
 0x743   : > { %v3077_v13 = vpop.f32.mrf.mxu0 }
 0x745   : > { %v2269_v63 = vpop.f32.mrf.mxu0 }
 0x746   : > { %2344 = vrot.lane.b32.xlu1 %v3077_v13, %s3382_s16  ;;  %2340 = vrot.lane.b32.xlu0 %v2269_v63, %s3382_s16 }
 0x747   : > { %v3078_v26 = vpop.f32.mrf.mxu0 }
 0x749   : > { %v2272_v51 = vpop.f32.mrf.mxu0 }
 0x74a   : > { %2346 = vrot.lane.b32.xlu1 %v3078_v26, %s3382_s16 }
 0x74b   : > { %v3081_v42 = vpop.f32.mrf.mxu0 }
 0x74c   : > { %2352 = vrot.lane.b32.xlu0 %v3081_v42, %s3382_s16 }
 0x74d   : > { %v2285_v14 = vpop.f32.mrf.mxu0 }
 0x74e   : > { %2342 = vrot.lane.b32.xlu1 %v2272_v51, %s3382_s16 }
 0x74f   : > { %v3082_v4 = vpop.f32.mrf.mxu0 }
 0x750   : > { %2348 = vrot.lane.b32.xlu0 %v2285_v14, %s3382_s16 }
 0x751   : > { %v2288_v32 = vpop.f32.mrf.mxu0 }
 0x752   : > { %2354 = vrot.lane.b32.xlu1 %v3082_v4, %s3382_s16 }
 0x754   : > { %2336 = vrot.lane.b32.xlu0 %v3073_v40, %s3382_s16 }
 0x756   : > { %2350 = vrot.lane.b32.xlu1 %v2288_v32, %s3382_s16 }
 0x75a   : > { %2338 = vrot.lane.b32.xlu1 %v3074_v25, %s3382_s16 }
 0x777   : > { %v3085_v22 = vpop.f32.mrf.mxu0 }
 0x779   : > { %v2301_v50 = vpop.f32.mrf.mxu0 }
 0x77a   : > { %2356 = vrot.lane.b32.xlu0 %v2301_v50, %s3382_s16 }
 0x77b   : > { %v3086_v52 = vpop.f32.mrf.mxu0 }
 0x77d   : > { %v2304_v33 = vpop.f32.mrf.mxu0 }
 0x77e   : > { %2360 = vrot.lane.b32.xlu0 %v3085_v22, %s3382_s16  ;;  %2358 = vrot.lane.b32.xlu1 %v2304_v33, %s3382_s16 }
 0x782   : > { %2362 = vrot.lane.b32.xlu1 %v3086_v52, %s3382_s16 }
 0x7b0   : > { %v2333_v28 = vpop.permute.xlu0 %2332 }
 0x7b1   : > { %2381 = vst.msk [vmem:[#allocation4] sm:$0xff] %vm2380_vm5, %v2333_v28 }
 0x7b4   : > { %v2335_v15 = vpop.permute.xlu1 %2334 }
 0x7b5   : > { %2382 = vst.msk [vmem:[#allocation4 + $0x8] sm:$0xff] %vm2380_vm5, %v2335_v15 }
 0x7b8   : > { %v2345_v54 = vpop.permute.xlu1 %2344  ;;  %v2341_v61 = vpop.permute.xlu0 %2340  ;;  %v2397_v36 = vld [vmem:[#allocation4] sm:$0xff] }
 0x7b9   : > { %2387 = vst.msk [vmem:[#allocation4 + $0x30] sm:$0xff] %vm2380_vm5, %v2345_v54  ;;  %2385 = vst.msk [vmem:[#allocation4 + $0x20] sm:$0xff] %vm2380_vm5, %v2341_v61 }
 0x7bc   : > { %v2347_v31 = vpop.permute.xlu1 %2346  ;;  %v2398_v34 = vld [vmem:[#allocation4 + $0x8] sm:$0xff] }
 0x7bd   : > { %2388 = vst.msk [vmem:[#allocation4 + $0x38] sm:$0xff] %vm2380_vm5, %v2347_v31  ;;  %v2413_v18 = vpack.c.bf16 %v2398_v34, %v2397_v36 }
 0x7be   : > { %v2353_v11 = vpop.permute.xlu0 %2352 }
 0x7bf   : > { %2391 = vst.msk [vmem:[#allocation4 + $0x50] sm:$0xff] %vm2380_vm5, %v2353_v11  ;;  %3091 = vmatprep.mubr.msk.bf16.mxu0 %vm1188_vm2, %v2413_v18 }
 0x7c0   : > { %v2343_v8 = vpop.permute.xlu1 %2342  ;;  %v2401_v39 = vld [vmem:[#allocation4 + $0x20] sm:$0xff]  ;;  %v2403_v44 = vld [vmem:[#allocation4 + $0x30] sm:$0xff] }
 0x7c1   : > { %2386 = vst.msk [vmem:[#allocation4 + $0x28] sm:$0xff] %vm2380_vm5, %v2343_v8 }
 0x7c2   : > { %v2349_v17 = vpop.permute.xlu0 %2348 }
 0x7c3   : > { %2389 = vst.msk [vmem:[#allocation4 + $0x40] sm:$0xff] %vm2380_vm5, %v2349_v17 }
 0x7c4   : > { %v2355_v38 = vpop.permute.xlu1 %2354  ;;  %v2404_v45 = vld [vmem:[#allocation4 + $0x38] sm:$0xff] }
 0x7c5   : > { %2392 = vst.msk [vmem:[#allocation4 + $0x58] sm:$0xff] %vm2380_vm5, %v2355_v38  ;;  %v2416_v7 = vpack.c.bf16 %v2404_v45, %v2403_v44 }
 0x7c6   : > { %v2337_v48 = vpop.permute.xlu0 %2336  ;;  %v2407_v6 = vld [vmem:[#allocation4 + $0x50] sm:$0xff] }
 0x7c7   : > { %2383 = vst.msk [vmem:[#allocation4 + $0x10] sm:$0xff] %vm2380_vm5, %v2337_v48 }
 0x7c8   : > { %v2351_v35 = vpop.permute.xlu1 %2350  ;;  %v2402_v30 = vld [vmem:[#allocation4 + $0x28] sm:$0xff] }
 0x7c9   : > { %2390 = vst.msk [vmem:[#allocation4 + $0x48] sm:$0xff] %vm2380_vm5, %v2351_v35  ;;  %v2415_v21 = vpack.c.bf16 %v2402_v30, %v2401_v39 }
 0x7ca   : > { %v2405_v27 = vld [vmem:[#allocation4 + $0x40] sm:$0xff] }
 0x7cb   : > { %3095 = vmatprep.mubr.msk.bf16.mxu1 %vm1188_vm2, %v2415_v21 }
 0x7cc   : > { %v2339_v47 = vpop.permute.xlu1 %2338  ;;  %3096 = vmatmul.mubr.msk.bf16.vlgmr.msra.gmra.mxu1 %vm1188_vm2, %v2416_v7  ;;  %v2408_v62 = vld [vmem:[#allocation4 + $0x58] sm:$0xff] }
 0x7cd   : > { %2384 = vst.msk [vmem:[#allocation4 + $0x18] sm:$0xff] %vm2380_vm5, %v2339_v47  ;;  %v2418_v60 = vpack.c.bf16 %v2408_v62, %v2407_v6 }
 0x7ce   : > { %v2399_v24 = vld [vmem:[#allocation4 + $0x10] sm:$0xff] }
 0x7d0   : > { %v2406_v46 = vld [vmem:[#allocation4 + $0x48] sm:$0xff] }
 0x7d1   : > { %v2417_v37 = vpack.c.bf16 %v2406_v46, %v2405_v27 }
 0x7d3   : > { %3099 = vmatprep.mubr.msk.bf16.mxu1 %vm1188_vm2, %v2417_v37 }
 0x7d4   : > { %3100 = vmatmul.mubr.msk.bf16.gmra.mxu1 %vm1188_vm2, %v2418_v60  ;;  %v2400_v55 = vld [vmem:[#allocation4 + $0x18] sm:$0xff] }
 0x7d5   : > { %v2414_v2 = vpack.c.bf16 %v2400_v55, %v2399_v24 }
 0x7d7   : > { %3092 = vmatmul.mubr.msk.bf16.vlgmr.msra.gmra.mxu0 %vm1188_vm2, %v2414_v2 }
 0x7ec   : > { %v2357_v0 = vpop.permute.xlu0 %2356 }
 0x7ed   : > { %2393 = vst.msk [vmem:[#allocation4 + $0x60] sm:$0xff] %vm2380_vm5, %v2357_v0 }
 0x7f0   : > { %v2359_v53 = vpop.permute.xlu1 %2358  ;;  %v2361_v10 = vpop.permute.xlu0 %2360 }
 0x7f1   : > { %2394 = vst.msk [vmem:[#allocation4 + $0x68] sm:$0xff] %vm2380_vm5, %v2359_v53  ;;  %2395 = vst.msk [vmem:[#allocation4 + $0x70] sm:$0xff] %vm2380_vm5, %v2361_v10 }
 0x7f4   : > { %v2363_v59 = vpop.permute.xlu1 %2362  ;;  %v2409_v20 = vld [vmem:[#allocation4 + $0x60] sm:$0xff] }
 0x7f5   : > { %2396 = vst.msk [vmem:[#allocation4 + $0x78] sm:$0xff] %vm2380_vm5, %v2363_v59 }
 0x7f8   : > { %v2410_v49 = vld [vmem:[#allocation4 + $0x68] sm:$0xff]  ;;  %v2411_v23 = vld [vmem:[#allocation4 + $0x70] sm:$0xff] }
 0x7f9   : > { %v2419_v57 = vpack.c.bf16 %v2410_v49, %v2409_v20 }
 0x7fb   : > { %3103 = vmatprep.mubr.msk.bf16.mxu1 %vm1188_vm2, %v2419_v57 }
 0x7fc   : > { %v2412_v41 = vld [vmem:[#allocation4 + $0x78] sm:$0xff] }
 0x7fd   : > { %v2420_v1 = vpack.c.bf16 %v2412_v41, %v2411_v23 }
 0x7ff   : > { %3104 = vmatmul.mubr.msk.bf16.gmra.mxu1 %vm1188_vm2, %v2420_v1 }
 0x88c   : > { %v3097_v9 = vpop.f32.mrf.mxu1 }
 0x88d   : > { %v2527_v58 = vadd.f32 %v3097_v9, %v2801_v29 }
 0x88e   : > { %v2518_v19 = vpop.f32.mrf.mxu1 }
 0x88f   : > { %2571 = vst.msk [vmem:[%s3501_s17 + $0x30] sm:$0xff] %vm1188_vm2, %v2527_v58  ;;  %v2519_v56 = vadd.f32 %v2801_v29, %v2518_v19 }
 0x890   : > { %v3098_v43 = vpop.f32.mrf.mxu1 }
 0x891   : > { %2569 = vst.msk [vmem:[%s3501_s17 + $0x20] sm:$0xff] %vm1188_vm2, %v2519_v56  ;;  %v2530_v40 = vadd.f32 %v3098_v43, %v2801_v29 }
 0x892   : > { %v2521_v3 = vpop.f32.mrf.mxu1 }
 0x893   : > { %2572 = vst.msk [vmem:[%s3501_s17 + $0x38] sm:$0xff] %vm1188_vm2, %v2530_v40  ;;  %v2522_v25 = vadd.f32 %v2801_v29, %v2521_v3 }
 0x894   : > { %v3101_v16 = vpop.f32.mrf.mxu1 }
 0x895   : > { %2570 = vst.msk [vmem:[%s3501_s17 + $0x28] sm:$0xff] %vm1188_vm2, %v2522_v25  ;;  %v2543_v12 = vadd.f32 %v3101_v16, %v2801_v29 }
 0x896   : > { %v2534_v13 = vpop.f32.mrf.mxu1 }
 0x897   : > { %2575 = vst.msk [vmem:[%s3501_s17 + $0x50] sm:$0xff] %vm1188_vm2, %v2543_v12  ;;  %v2535_v63 = vadd.f32 %v2801_v29, %v2534_v13  ;;  %v3093_v5 = vpop.f32.mrf.mxu0 }
 0x898   : > { %v2511_v26 = vadd.f32 %v3093_v5, %v2801_v29  ;;  %v3102_v51 = vpop.f32.mrf.mxu1 }
 0x899   : > { %2573 = vst.msk [vmem:[%s3501_s17 + $0x40] sm:$0xff] %vm1188_vm2, %v2535_v63  ;;  %v2546_v42 = vadd.f32 %v3102_v51, %v2801_v29  ;;  %v2502_v14 = vpop.f32.mrf.mxu0 }
 0x89a   : > { %2567 = vst.msk [vmem:[%s3501_s17 + $0x10] sm:$0xff] %vm1188_vm2, %v2511_v26  ;;  %v2503_v4 = vadd.f32 %v2801_v29, %v2502_v14  ;;  %v2537_v32 = vpop.f32.mrf.mxu1 }
 0x89b   : > { %2576 = vst.msk [vmem:[%s3501_s17 + $0x58] sm:$0xff] %vm1188_vm2, %v2546_v42  ;;  %v2538_v22 = vadd.f32 %v2801_v29, %v2537_v32  ;;  %v3094_v50 = vpop.f32.mrf.mxu0 }
 0x89c   : > { %2565 = vst.msk [vmem:[%s3501_s17] sm:$0xff] %vm1188_vm2, %v2503_v4  ;;  %v2514_v52 = vadd.f32 %v3094_v50, %v2801_v29 }
 0x89d   : > { %2574 = vst.msk [vmem:[%s3501_s17 + $0x48] sm:$0xff] %vm1188_vm2, %v2538_v22  ;;  %v2505_v33 = vpop.f32.mrf.mxu0 }
 0x89e   : > { %2568 = vst.msk [vmem:[%s3501_s17 + $0x18] sm:$0xff] %vm1188_vm2, %v2514_v52  ;;  %v2506_v28 = vadd.f32 %v2801_v29, %v2505_v33 }
 0x8a0   : > { %2566 = vst.msk [vmem:[%s3501_s17 + $0x8] sm:$0xff] %vm1188_vm2, %v2506_v28 }
 0x8bf   : > { %v3105_v15 = vpop.f32.mrf.mxu1 }
 0x8c0   : > { %v2559_v54 = vadd.f32 %v3105_v15, %v2801_v29 }
 0x8c1   : > { %v2550_v61 = vpop.f32.mrf.mxu1 }
 0x8c2   : > { %2579 = vst.msk [vmem:[%s3501_s17 + $0x70] sm:$0xff] %vm1188_vm2, %v2559_v54  ;;  %v2551_v31 = vadd.f32 %v2801_v29, %v2550_v61 }
 0x8c3   : > { %v3106_v36 = vpop.f32.mrf.mxu1 }
 0x8c4   : > { %2577 = vst.msk [vmem:[%s3501_s17 + $0x60] sm:$0xff] %vm1188_vm2, %v2551_v31  ;;  %v2562_v34 = vadd.f32 %v3106_v36, %v2801_v29 }
 0x8c5   : > { %v2553_v18 = vpop.f32.mrf.mxu1 }
 0x8c6   : > { %2580 = vst.msk [vmem:[%s3501_s17 + $0x78] sm:$0xff] %vm1188_vm2, %v2562_v34  ;;  %v2554_v11 = vadd.f32 %v2801_v29, %v2553_v18 }
 0x8c8   : > { %2578 = vst.msk [vmem:[%s3501_s17 + $0x68] sm:$0xff] %vm1188_vm2, %v2554_v11 }
 0x8c9 PF: > { %s4225_s22 = sld [smem:[#allocation7_spill]] }
 0x8ca   : > { %s4226_s29 = sld [smem:[#allocation5_spill]] }
 0x8cb   : > { %s4227_s30 = sld [smem:[#allocation6_spill]] }
 0x8cc   : > { %s4228_s15 = sld [smem:[#allocation8_spill]] }
 0x8cd   : > { %s4229_s16 = sld [smem:[#allocation9_spill]] }
 0x8cf   : > { %s24_s17 = sadd.s32 1, %s4225_s22  }
 0x8d0   : > { %p21_p8 = scmp.ge.s32.totalorder %s24_s17, 6  }
 0x8d2   :  { %23 = sbr.rel (!%p21_p8) target bundleno = 3 (0x3), region = 113 }

</bundles_post_ra>
